<compile_context>
chip_gen: v5e
topology: v5e:2x2
jax: 0.10.0
libtpu: 0.0.40
codegen_flags: <defaults>
</compile_context>

<pallas_src>
import jax
import jax.numpy as jnp
from jax.experimental import pallas as pl
from jax.experimental.pallas import tpu as pltpu

LN_EPS = 1e-5
MASK_NEG = -1e9


# ---------------------------------------------------------------------------
# wrapper-side layout helpers (pure XLA, free)
# ---------------------------------------------------------------------------
def _split_heads_cols(w, H, dh):
    """(D_in, H*dh) -> (H, D_in, dh); head h holds w[:, h*dh:(h+1)*dh]."""
    D_in = w.shape[0]
    return w.reshape(D_in, H, dh).transpose(1, 0, 2)


def _split_heads_rows(b, H, dh):
    """(R, H*dh) -> (H, R, dh)."""
    R = b.shape[0]
    return b.reshape(R, H, dh).transpose(1, 0, 2)


def _split_heads_batched(b, H, dh):
    """(B, L, H*dh) -> (H, B*L, dh) keeping (batch, position) row order."""
    B_, L_, _ = b.shape
    return b.reshape(B_, L_, H, dh).transpose(2, 0, 1, 3).reshape(H, B_ * L_, dh)


def _vmem_limit_bytes():
    """Per-generation scoped-VMEM limit (~3/4 of physical), conservative fallback."""
    kind = jax.devices()[0].device_kind.lower()
    try:
        cap = int(pltpu.get_tpu_info().vmem_capacity_bytes)
        cap = min(cap, 64 * 1024 * 1024 if "v7" in kind else 128 * 1024 * 1024)
        return (cap * 3) // 4
    except Exception:
        pass
    if "v7" in kind:
        return 48 * 1024 * 1024
    if "v6" in kind or "v5" in kind:
        return 96 * 1024 * 1024
    return 32 * 1024 * 1024


def _step_bytes(bt, Lq, Lkv, D, Dff, H):
    """Rough per-grid-step activation footprint used to size the batch block."""
    rq, rk = bt * Lq, bt * Lkv
    io = 2 * 4 * (2 * rq * D + rk * D)                 # double-buffered x/out/kv
    act = 4 * (5 * rq * D + 5 * rk * D + rq * Dff + bt * H * Lq * Lkv)
    bcast = 2 * H * (rq + 2 * rk) * D                  # bf16 broadcast copies
    return io + act + bcast


def _pick_block_b(B, Lq, Lkv, D, Dff, H, budget):
    best = 1
    for bt in range(1, B + 1):
        if B % bt:
            continue
        if B >= 2 and B // bt < 2:
            # keep >= 2 grid steps so both v7x TensorCores / the software
            # pipeline have work
            continue
        if _step_bytes(bt, Lq, Lkv, D, Dff, H) <= budget:
            best = bt
    return best


# ---------------------------------------------------------------------------
# fused kernel: pre-norm cross attention + FFN for one block of Bt batch rows
# ---------------------------------------------------------------------------
def make_cross_attention_kernel(H, Bt, Lq, Lkv, D, dh,
                                has_q_bias_b, has_k_bias_b, has_mask,
                                compute_dtype=jnp.bfloat16):
    cdt = compute_dtype
    BtLq, BtLkv = Bt * Lq, Bt * Lkv
    f32 = jnp.float32

    def kernel(*refs):
        refs = list(refs)
        o_ref = refs.pop()                         # (Bt*Lq, D)
        x_ref = refs.pop(0)                        # (Bt*Lq, D)
        kv_ref = refs.pop(0)                       # (Bt*Lkv, D)
        qb_b_ref = refs.pop(0) if has_q_bias_b else None   # (H, Bt*Lq, dh)
        kb_b_ref = refs.pop(0) if has_k_bias_b else None   # (H, Bt*Lkv, dh)
        mask_ref = refs.pop(0) if has_mask else None        # (Bt, 1, Lkv)
        (g0_ref, be0_ref, g1_ref, be1_ref,
         wq_ref, qb_ref, wkv_ref, kb_ref, vb_ref,
         wo_ref, bo_ref, w1_ref, b1_ref, w2_ref, b2_ref) = refs

        def layernorm(h, g_ref, b_ref):
            mu = jnp.mean(h, axis=-1, keepdims=True)
            var = jnp.mean((h - mu) * (h - mu), axis=-1, keepdims=True)
            return (h - mu) * jax.lax.rsqrt(var + LN_EPS) * g_ref[...] + b_ref[...]

        x = x_ref[...].astype(f32)                 # (Bt*Lq, D)
        kvr = kv_ref[...].astype(f32)              # (Bt*Lkv, D)

        x0 = layernorm(x, g0_ref, be0_ref)
        kv0 = layernorm(kvr, g1_ref, be1_ref)

        # head-batched Q projection and fused K|V projection
        # (bf16 operands, f32 MXU accumulation; weights are pre-head-split)
        x0b = jnp.broadcast_to(x0.astype(cdt)[None], (H, BtLq, D))
        kv0b = jnp.broadcast_to(kv0.astype(cdt)[None], (2 * H, BtLkv, D))
        qh = jnp.einsum("hqd,hdf->hqf", x0b, wq_ref[...],
                        preferred_element_type=f32)          # (H, Bt*Lq, dh)
        kvh = jnp.einsum("hqd,hdf->hqf", kv0b, wkv_ref[...],
                         preferred_element_type=f32)         # (2H, Bt*Lkv, dh)
        if has_q_bias_b:
            qh = qh + qb_b_ref[...]                          # per-batch qpos @ Wq
        kh = kvh[:H]
        if has_k_bias_b:
            kh = kh + kb_b_ref[...]                          # per-batch kpos @ Wk
        vh = kvh[H:] + vb_ref[...]                           # (H, Bt*Lkv, dh)

        q_bias = qb_ref[...]        # (H, 1|Lq,  dh)  (1/sqrt(dh) folded in)
        k_bias = kb_ref[...]        # (H, 1|Lkv, dh)
        wo_w = wo_ref[...]          # (H, dh, D)

        y_rows = []
        for r in range(Bt):         # per-batch-row attention; small static trip
            qs = (qh[:, r * Lq:(r + 1) * Lq, :] + q_bias).astype(cdt)
            ks = (kh[:, r * Lkv:(r + 1) * Lkv, :] + k_bias).astype(cdt)
            vs = vh[:, r * Lkv:(r + 1) * Lkv, :].astype(cdt)
            s = jnp.einsum("hqd,hkd->hqk", qs, ks,
                           preferred_element_type=f32)       # (H, Lq, Lkv) f32
            if has_mask:
                s = s + mask_ref[r][None]                    # one broadcast add
            m = jnp.max(s, axis=-1, keepdims=True)
            p = jnp.exp(s - m)
            denom = jnp.sum(p, axis=-1, keepdims=True)
            p = p * pl.reciprocal(denom, approx=True)        # EUP, keeps VALU free
            ctx = jnp.einsum("hqk,hkd->hqd", p.astype(cdt), vs,
                             preferred_element_type=f32)     # (H, Lq, dh)
            # sum_h ctx_h @ Wo[h]  ==  concat_h(ctx_h) @ Wo  (no lane concat)
            y_rows.append(jnp.sum(
                jnp.einsum("hqd,hdf->hqf", ctx.astype(cdt), wo_w,
                           preferred_element_type=f32), axis=0))   # (Lq, D)
        y = y_rows[0] if Bt == 1 else jnp.concatenate(y_rows, axis=0)

        x1 = x + y + bo_ref[...]                             # residual (dropout=0)

        # FFN; the PyTorch module reuses norm[1] as the FFN pre-norm.
        hidden = layernorm(x1, g1_ref, be1_ref).astype(cdt)
        h_ff = jnp.maximum(
            jnp.dot(hidden, w1_ref[...], preferred_element_type=f32)
            + b1_ref[...], 0.0).astype(cdt)                  # bf16 intermediate
        z = jnp.dot(h_ff, w2_ref[...], preferred_element_type=f32) + b2_ref[...]

        o_ref[...] = (x1 + z).astype(o_ref.dtype)

    return kernel


# ---------------------------------------------------------------------------
# wrapper
# ---------------------------------------------------------------------------
def cross_attention(x, kv, params, H, key_mask=None, query_pos=None,
                    key_pos=None, compute_dtype=jnp.bfloat16, block_b=None):
    """x: [B, Lq, D], kv: [B, Lkv, D] -> [B, Lq, D]  (eval mode, dropout = 0)."""
    B, Lq, D = x.shape
    Lkv = kv.shape[1]
    assert D % H == 0
    dh = D // H
    Dff = params["w1"].shape[1]
    cdt = compute_dtype
    f32 = jnp.float32
    scale = 1.0 / (float(dh) ** 0.5)

    def norm_pos(p):
        if p is None:
            return None
        p = jnp.asarray(p, f32)
        if p.ndim == 3 and p.shape[0] == 1:
            p = p[0]
        return p

    query_pos = norm_pos(query_pos)
    key_pos = norm_pos(key_pos)

    # fold the attention scale into the Q projection; fold positional
    # embeddings into post-projection biases (never broadcast to (B, L, D)).
    wq_s = params["wq"].astype(f32) * scale
    q_bias = params["bq"].astype(f32) * scale                  # (1, D)
    q_bias_b = None
    if query_pos is not None:
        qp = query_pos @ wq_s
        if qp.ndim == 2:
            q_bias = q_bias + qp                               # (Lq, D) shared
        else:
            q_bias_b = qp                                      # (B, Lq, D)

    k_bias = params["bk"].astype(f32)                          # (1, D)
    k_bias_b = None
    if key_pos is not None:
        kp = key_pos @ params["wk"].astype(f32)
        if kp.ndim == 2:
            k_bias = k_bias + kp                               # (Lkv, D) shared
        else:
            k_bias_b = kp                                      # (B, Lkv, D)

    # head-split weights wrapper-side so the kernel never lane-slices,
    # transposes or concatenates activations.
    wq_r = _split_heads_cols(wq_s, H, dh).astype(cdt)                  # (H, D, dh)
    wkv_r = jnp.concatenate(
        [_split_heads_cols(params["wk"].astype(f32), H, dh),
         _split_heads_cols(params["wv"].astype(f32), H, dh)],
        axis=0).astype(cdt)                                            # (2H, D, dh)
    wo_r = params["wo"].astype(f32).reshape(H, dh, D).astype(cdt)      # (H, dh, D)
    q_bias_r = _split_heads_rows(q_bias, H, dh)                        # (H, 1|Lq, dh)
    k_bias_r = _split_heads_rows(k_bias, H, dh)                        # (H, 1|Lkv, dh)
    v_bias_r = _split_heads_rows(params["bv"].astype(f32), H, dh)      # (H, 1, dh)

    resident = [
        params["ln0_g"].astype(f32), params["ln0_b"].astype(f32),
        params["ln1_g"].astype(f32), params["ln1_b"].astype(f32),
        wq_r, q_bias_r, wkv_r, k_bias_r, v_bias_r,
        wo_r, params["bo"].astype(f32),
        params["w1"].astype(cdt), params["b1"].astype(f32),
        params["w2"].astype(cdt), params["b2"].astype(f32),
    ]
    resident_bytes = sum(int(p.size) * p.dtype.itemsize for p in resident)

    vmem_limit = _vmem_limit_bytes()
    if block_b is None:
        budget = max(vmem_limit - 2 * resident_bytes, 1 * 1024 * 1024)
        Bt = _pick_block_b(B, Lq, Lkv, D, Dff, H, budget)
    else:
        Bt = int(block_b)
        assert B % Bt == 0, "block_b must divide the batch size"

    has_q_bias_b = q_bias_b is not None
    has_k_bias_b = k_bias_b is not None
    has_mask = key_mask is not None

    # --- per-batch-block (grid-sliced) operands: lane/sublane-dense 2-D slabs
    operands = [x.reshape(B * Lq, D), kv.reshape(B * Lkv, D)]
    in_specs = [
        pl.BlockSpec((Bt * Lq, D), lambda b: (b, 0)),
        pl.BlockSpec((Bt * Lkv, D), lambda b: (b, 0)),
    ]
    if has_q_bias_b:
        operands.append(_split_heads_batched(q_bias_b, H, dh))         # (H, B*Lq, dh)
        in_specs.append(pl.BlockSpec((H, Bt * Lq, dh), lambda b: (0, b, 0)))
    if has_k_bias_b:
        operands.append(_split_heads_batched(k_bias_b, H, dh))         # (H, B*Lkv, dh)
        in_specs.append(pl.BlockSpec((H, Bt * Lkv, dh), lambda b: (0, b, 0)))
    if has_mask:
        mask_bias = jnp.where(key_mask, MASK_NEG, 0.0).astype(f32)[:, None, :]
        operands.append(mask_bias)                                     # (B, 1, Lkv)
        in_specs.append(pl.BlockSpec((Bt, 1, Lkv), lambda b: (b, 0, 0)))

    kernel = make_cross_attention_kernel(
        H, Bt, Lq, Lkv, D, dh, has_q_bias_b, has_k_bias_b, has_mask, cdt)

    def _const_index_map(ndim):
        zeros = (0,) * ndim

        def imap(b):
            return zeros
        return imap

    def _const_spec(p, pipeline_mode):
        if pipeline_mode is None:
            return pl.BlockSpec(p.shape, _const_index_map(p.ndim))
        return pl.BlockSpec(p.shape, _const_index_map(p.ndim),
                            pipeline_mode=pipeline_mode)

    def _build(single_buffer_weights):
        pm = pl.Buffered(1) if single_buffer_weights else None
        specs = in_specs + [_const_spec(p, pm) for p in resident]
        return pl.pallas_call(
            kernel,
            out_shape=jax.ShapeDtypeStruct((B * Lq, D), x.dtype),
            grid_spec=pltpu.PrefetchScalarGridSpec(
                num_scalar_prefetch=0,
                grid=(B // Bt,),
                in_specs=specs,
                out_specs=pl.BlockSpec((Bt * Lq, D), lambda b: (b, 0)),
            ),
            compiler_params=pltpu.CompilerParams(
                dimension_semantics=("parallel",),
                vmem_limit_bytes=vmem_limit,
            ),
        )

    args = operands + resident
    try:
        # resident weights never change across grid steps -> single-buffer them
        out2d = _build(True)(*args)
    except Exception:
        # TODO(synk): pl.Buffered(1) unsupported on this jax/libtpu; fall back
        # to default double-buffered resident weights.
        out2d = _build(False)(*args)
    return out2d.reshape(B, Lq, D)


# ---------------------------------------------------------------------------
# Pure-JAX reference mirroring the PyTorch forward (eval mode, dropout = 0).
# ---------------------------------------------------------------------------
def cross_attention_ref(x, kv, params, H, key_mask=None, query_pos=None,
                        key_pos=None):
    B, Lq, D = x.shape
    Lkv = kv.shape[1]
    dh = D // H

    def ln(t, g, b):
        mu = jnp.mean(t, axis=-1, keepdims=True)
        var = jnp.mean((t - mu) ** 2, axis=-1, keepdims=True)
        return (t - mu) / jnp.sqrt(var + LN_EPS) * g + b

    x0 = ln(x, params["ln0_g"], params["ln0_b"])
    kv0 = ln(kv, params["ln1_g"], params["ln1_b"])
    q_in = x0 if query_pos is None else x0 + query_pos
    k_in = kv0 if key_pos is None else kv0 + key_pos

    q = q_in @ params["wq"] + params["bq"]
    k = k_in @ params["wk"] + params["bk"]
    v = kv0 @ params["wv"] + params["bv"]

    qh = q.reshape(B, Lq, H, dh).transpose(0, 2, 1, 3)
    kh = k.reshape(B, Lkv, H, dh).transpose(0, 2, 1, 3)
    vh = v.reshape(B, Lkv, H, dh).transpose(0, 2, 1, 3)
    s = jnp.einsum("bhqd,bhkd->bhqk", qh, kh) / jnp.sqrt(float(dh))
    if key_mask is not None:
        s = s + jnp.where(key_mask, MASK_NEG, 0.0)[:, None, None, :]
    p = jax.nn.softmax(s, axis=-1)
    ctx = jnp.einsum("bhqk,bhkd->bhqd", p, vh)
    ctx = ctx.transpose(0, 2, 1, 3).reshape(B, Lq, D)

    y = ctx @ params["wo"] + params["bo"]
    x1 = x + y
    h_ff = jax.nn.relu(ln(x1, params["ln1_g"], params["ln1_b"]) @ params["w1"]
                       + params["b1"])
    z = h_ff @ params["w2"] + params["b2"]
    return x1 + z


def init_params(key, D, H, k=4):
    """Deterministic synthetic init; linear weights stored as [in, out]."""
    Dff = k * D
    ks = jax.random.split(key, 16)

    def lin(kw, kb, fan_in, fan_out):
        bound = 1.0 / (float(fan_in) ** 0.5)
        wm = jax.random.uniform(kw, (fan_in, fan_out), jnp.float32, -bound, bound)
        bm = jax.random.uniform(kb, (1, fan_out), jnp.float32, -bound, bound)
        return wm, bm

    wq, bq = lin(ks[0], ks[1], D, D)
    wk, bk = lin(ks[2], ks[3], D, D)
    wv, bv = lin(ks[4], ks[5], D, D)
    wo, bo = lin(ks[6], ks[7], D, D)
    w1, b1 = lin(ks[8], ks[9], D, Dff)
    w2, b2 = lin(ks[10], ks[11], Dff, D)

    def affine(kk, n):  # non-trivial LN affine so the test exercises it
        g = 1.0 + 0.1 * jax.random.normal(kk, (1, n), jnp.float32)
        b = 0.1 * jax.random.normal(jax.random.fold_in(kk, 1), (1, n), jnp.float32)
        return g, b

    ln0_g, ln0_b = affine(ks[12], D)
    ln1_g, ln1_b = affine(ks[13], D)
    # norm[2] exists in the PyTorch module but is unused in forward().
    return {
        "ln0_g": ln0_g, "ln0_b": ln0_b, "ln1_g": ln1_g, "ln1_b": ln1_b,
        "wq": wq, "bq": bq, "wk": wk, "bk": bk, "wv": wv, "bv": bv,
        "wo": wo, "bo": bo, "w1": w1, "b1": b1, "w2": w2, "b2": b2,
    }


if __name__ == "__main__":
    B, Lq, Lkv, D, H, K = 2, 8, 16, 32, 4, 4

    key = jax.random.PRNGKey(0)
    kx, kkv, kp, kqp, kkp = jax.random.split(key, 5)
    x = jax.random.normal(kx, (B, Lq, D), jnp.float32)
    kv = jax.random.normal(kkv, (B, Lkv, D), jnp.float32)
    params = init_params(kp, D, H, K)

    # Path 1: no mask / no positional embeddings (auto batch blocking, grid=(2,)).
    out = jax.block_until_ready(cross_attention(x, kv, params, H))
    ref = cross_attention_ref(x, kv, params, H)
    assert out.shape == (B, Lq, D), out.shape
    err = float(jnp.max(jnp.abs(out - ref)))
    assert jnp.allclose(out, ref, atol=3e-2, rtol=3e-2), (
        "mismatch (no mask): max abs err = " + str(err))

    # Path 2: key padding mask + shared query_pos + per-batch key_pos, and
    # block_b=2 so the multi-row (Bt > 1) path is exercised.
    qpos = 0.1 * jax.random.normal(kqp, (Lq, D), jnp.float32)       # batch-shared
    kpos = 0.1 * jax.random.normal(kkp, (B, Lkv, D), jnp.float32)   # per-batch
    key_mask = jnp.zeros((B, Lkv), jnp.bool_).at[0, Lkv - 5:].set(True)

    out2 = jax.block_until_ready(
        cross_attention(x, kv, params, H, key_mask=key_mask,
                        query_pos=qpos, key_pos=kpos, block_b=2))
    ref2 = cross_attention_ref(x, kv, params, H, key_mask=key_mask,
                               query_pos=qpos, key_pos=kpos)
    err2 = float(jnp.max(jnp.abs(out2 - ref2)))
    assert jnp.allclose(out2, ref2, atol=3e-2, rtol=3e-2), (
        "mismatch (masked): max abs err = " + str(err2))

    print("KERNEL_OK")
</pallas_src>

<mosaic_0001>
module attributes {stable_mosaic.version = 11 : i64} {
  func.func @kernel(%arg0: i32, %arg1: memref<8x32xf32, #tpu.memory_space<vmem>>, %arg2: memref<16x32xf32, #tpu.memory_space<vmem>>, %arg3: memref<1x32xf32, #tpu.memory_space<vmem>>, %arg4: memref<1x32xf32, #tpu.memory_space<vmem>>, %arg5: memref<1x32xf32, #tpu.memory_space<vmem>>, %arg6: memref<1x32xf32, #tpu.memory_space<vmem>>, %arg7: memref<4x32x8xbf16, #tpu.memory_space<vmem>>, %arg8: memref<4x1x8xf32, #tpu.memory_space<vmem>>, %arg9: memref<8x32x8xbf16, #tpu.memory_space<vmem>>, %arg10: memref<4x1x8xf32, #tpu.memory_space<vmem>>, %arg11: memref<4x1x8xf32, #tpu.memory_space<vmem>>, %arg12: memref<4x8x32xbf16, #tpu.memory_space<vmem>>, %arg13: memref<1x32xf32, #tpu.memory_space<vmem>>, %arg14: memref<32x128xbf16, #tpu.memory_space<vmem>>, %arg15: memref<1x128xf32, #tpu.memory_space<vmem>>, %arg16: memref<128x32xbf16, #tpu.memory_space<vmem>>, %arg17: memref<1x32xf32, #tpu.memory_space<vmem>>, %arg18: memref<8x32xf32, #tpu.memory_space<vmem>>) attributes {dimension_semantics = [#tpu.dimension_semantics<parallel>], iteration_bounds = array<i64: 2>, scalar_prefetch = 0 : i64, scratch_operands = 0 : i64, tpu.core_type = #tpu.core_type<tc>, window_params = [{transform_indices = @transform_0, window_bounds = array<i64: 8, 32>}, {transform_indices = @transform_1, window_bounds = array<i64: 16, 32>}, {pipeline_mode = #tpu.pipeline_mode<synchronous>, transform_indices = @transform_2, window_bounds = array<i64: 1, 32>}, {pipeline_mode = #tpu.pipeline_mode<synchronous>, transform_indices = @transform_3, window_bounds = array<i64: 1, 32>}, {pipeline_mode = #tpu.pipeline_mode<synchronous>, transform_indices = @transform_4, window_bounds = array<i64: 1, 32>}, {pipeline_mode = #tpu.pipeline_mode<synchronous>, transform_indices = @transform_5, window_bounds = array<i64: 1, 32>}, {pipeline_mode = #tpu.pipeline_mode<synchronous>, transform_indices = @transform_6, window_bounds = array<i64: 4, 32, 8>}, {pipeline_mode = #tpu.pipeline_mode<synchronous>, transform_indices = @transform_7, window_bounds = array<i64: 4, 1, 8>}, {pipeline_mode = #tpu.pipeline_mode<synchronous>, transform_indices = @transform_8, window_bounds = array<i64: 8, 32, 8>}, {pipeline_mode = #tpu.pipeline_mode<synchronous>, transform_indices = @transform_9, window_bounds = array<i64: 4, 1, 8>}, {pipeline_mode = #tpu.pipeline_mode<synchronous>, transform_indices = @transform_10, window_bounds = array<i64: 4, 1, 8>}, {pipeline_mode = #tpu.pipeline_mode<synchronous>, transform_indices = @transform_11, window_bounds = array<i64: 4, 8, 32>}, {pipeline_mode = #tpu.pipeline_mode<synchronous>, transform_indices = @transform_12, window_bounds = array<i64: 1, 32>}, {pipeline_mode = #tpu.pipeline_mode<synchronous>, transform_indices = @transform_13, window_bounds = array<i64: 32, 128>}, {pipeline_mode = #tpu.pipeline_mode<synchronous>, transform_indices = @transform_14, window_bounds = array<i64: 1, 128>}, {pipeline_mode = #tpu.pipeline_mode<synchronous>, transform_indices = @transform_15, window_bounds = array<i64: 128, 32>}, {pipeline_mode = #tpu.pipeline_mode<synchronous>, transform_indices = @transform_16, window_bounds = array<i64: 1, 32>}, {transform_indices = @transform_17, window_bounds = array<i64: 8, 32>}]} {
    %c0 = arith.constant 0 : index
    %c0_0 = arith.constant 0 : index
    %0 = vector.load %arg1[%c0, %c0_0] : memref<8x32xf32, #tpu.memory_space<vmem>>, vector<8x32xf32>
    %c0_1 = arith.constant 0 : index
    %c0_2 = arith.constant 0 : index
    %1 = vector.load %arg2[%c0_1, %c0_2] : memref<16x32xf32, #tpu.memory_space<vmem>>, vector<16x32xf32>
    %cst = arith.constant dense<0.000000e+00> : vector<8xf32>
    %2 = vector.multi_reduction <add>, %0, %cst [1] : vector<8x32xf32> to vector<8xf32>
    %3 = vector.shape_cast %2 : vector<8xf32> to vector<8x1xf32>
    %cst_3 = arith.constant 3.200000e+01 : f32
    %4 = vector.broadcast %cst_3 : f32 to vector<8x1xf32>
    %5 = arith.divf %3, %4 : vector<8x1xf32>
    %6 = vector.broadcast %5 : vector<8x1xf32> to vector<8x32xf32>
    %7 = arith.subf %0, %6 : vector<8x32xf32>
    %8 = vector.broadcast %5 : vector<8x1xf32> to vector<8x32xf32>
    %9 = arith.subf %0, %8 : vector<8x32xf32>
    %10 = arith.mulf %7, %9 : vector<8x32xf32>
    %cst_4 = arith.constant dense<0.000000e+00> : vector<8xf32>
    %11 = vector.multi_reduction <add>, %10, %cst_4 [1] : vector<8x32xf32> to vector<8xf32>
    %12 = vector.shape_cast %11 : vector<8xf32> to vector<8x1xf32>
    %cst_5 = arith.constant 3.200000e+01 : f32
    %13 = vector.broadcast %cst_5 : f32 to vector<8x1xf32>
    %14 = arith.divf %12, %13 : vector<8x1xf32>
    %15 = vector.broadcast %5 : vector<8x1xf32> to vector<8x32xf32>
    %16 = arith.subf %0, %15 : vector<8x32xf32>
    %cst_6 = arith.constant 9.99999974E-6 : f32
    %17 = vector.broadcast %cst_6 : f32 to vector<8x1xf32>
    %18 = arith.addf %14, %17 : vector<8x1xf32>
    %19 = math.rsqrt %18 : vector<8x1xf32>
    %20 = vector.broadcast %19 : vector<8x1xf32> to vector<8x32xf32>
    %21 = arith.mulf %16, %20 : vector<8x32xf32>
    %c0_7 = arith.constant 0 : index
    %c0_8 = arith.constant 0 : index
    %22 = vector.load %arg3[%c0_7, %c0_8] : memref<1x32xf32, #tpu.memory_space<vmem>>, vector<1x32xf32>
    %23 = vector.broadcast %22 : vector<1x32xf32> to vector<8x32xf32>
    %24 = arith.mulf %21, %23 : vector<8x32xf32>
    %c0_9 = arith.constant 0 : index
    %c0_10 = arith.constant 0 : index
    %25 = vector.load %arg4[%c0_9, %c0_10] : memref<1x32xf32, #tpu.memory_space<vmem>>, vector<1x32xf32>
    %26 = vector.broadcast %25 : vector<1x32xf32> to vector<8x32xf32>
    %27 = arith.addf %24, %26 : vector<8x32xf32>
    %cst_11 = arith.constant dense<0.000000e+00> : vector<16xf32>
    %28 = vector.multi_reduction <add>, %1, %cst_11 [1] : vector<16x32xf32> to vector<16xf32>
    %29 = vector.shape_cast %28 : vector<16xf32> to vector<16x1xf32>
    %cst_12 = arith.constant 3.200000e+01 : f32
    %30 = vector.broadcast %cst_12 : f32 to vector<16x1xf32>
    %31 = arith.divf %29, %30 : vector<16x1xf32>
    %32 = vector.broadcast %31 : vector<16x1xf32> to vector<16x32xf32>
    %33 = arith.subf %1, %32 : vector<16x32xf32>
    %34 = vector.broadcast %31 : vector<16x1xf32> to vector<16x32xf32>
    %35 = arith.subf %1, %34 : vector<16x32xf32>
    %36 = arith.mulf %33, %35 : vector<16x32xf32>
    %cst_13 = arith.constant dense<0.000000e+00> : vector<16xf32>
    %37 = vector.multi_reduction <add>, %36, %cst_13 [1] : vector<16x32xf32> to vector<16xf32>
    %38 = vector.shape_cast %37 : vector<16xf32> to vector<16x1xf32>
    %cst_14 = arith.constant 3.200000e+01 : f32
    %39 = vector.broadcast %cst_14 : f32 to vector<16x1xf32>
    %40 = arith.divf %38, %39 : vector<16x1xf32>
    %41 = vector.broadcast %31 : vector<16x1xf32> to vector<16x32xf32>
    %42 = arith.subf %1, %41 : vector<16x32xf32>
    %cst_15 = arith.constant 9.99999974E-6 : f32
    %43 = vector.broadcast %cst_15 : f32 to vector<16x1xf32>
    %44 = arith.addf %40, %43 : vector<16x1xf32>
    %45 = math.rsqrt %44 : vector<16x1xf32>
    %46 = vector.broadcast %45 : vector<16x1xf32> to vector<16x32xf32>
    %47 = arith.mulf %42, %46 : vector<16x32xf32>
    %c0_16 = arith.constant 0 : index
    %c0_17 = arith.constant 0 : index
    %48 = vector.load %arg5[%c0_16, %c0_17] : memref<1x32xf32, #tpu.memory_space<vmem>>, vector<1x32xf32>
    %49 = vector.broadcast %48 : vector<1x32xf32> to vector<16x32xf32>
    %50 = arith.mulf %47, %49 : vector<16x32xf32>
    %c0_18 = arith.constant 0 : index
    %c0_19 = arith.constant 0 : index
    %51 = vector.load %arg6[%c0_18, %c0_19] : memref<1x32xf32, #tpu.memory_space<vmem>>, vector<1x32xf32>
    %52 = vector.broadcast %51 : vector<1x32xf32> to vector<16x32xf32>
    %53 = arith.addf %50, %52 : vector<16x32xf32>
    %54 = arith.truncf %27 : vector<8x32xf32> to vector<8x32xbf16>
    %55 = vector.shape_cast %54 : vector<8x32xbf16> to vector<1x8x32xbf16>
    %56 = vector.shape_cast %55 : vector<1x8x32xbf16> to vector<1x8x32xbf16>
    %57 = vector.broadcast %56 : vector<1x8x32xbf16> to vector<4x8x32xbf16>
    %58 = arith.truncf %53 : vector<16x32xf32> to vector<16x32xbf16>
    %59 = vector.shape_cast %58 : vector<16x32xbf16> to vector<1x16x32xbf16>
    %60 = vector.shape_cast %59 : vector<1x16x32xbf16> to vector<1x16x32xbf16>
    %61 = vector.broadcast %60 : vector<1x16x32xbf16> to vector<8x16x32xbf16>
    %c0_20 = arith.constant 0 : index
    %c0_21 = arith.constant 0 : index
    %c0_22 = arith.constant 0 : index
    %62 = vector.load %arg7[%c0_20, %c0_21, %c0_22] : memref<4x32x8xbf16, #tpu.memory_space<vmem>>, vector<4x32x8xbf16>
    "tpu.trace_start"() <{level = 10 : i32, message = "hqd,hdf->hqf"}> : () -> ()
    %cst_23 = arith.constant dense<0.000000e+00> : vector<4x8x8xf32>
    %63 = tpu.matmul %57, %62, %cst_23 {dimension_numbers = #tpu.dot_dimension_numbers<[2], [1], [1], [2], [0, 0, 0, 1, 1, 2], [0], [0]>} : vector<4x8x32xbf16>, vector<4x32x8xbf16>, vector<4x8x8xf32> -> vector<4x8x8xf32>
    "tpu.trace_stop"() : () -> ()
    %c0_24 = arith.constant 0 : index
    %c0_25 = arith.constant 0 : index
    %c0_26 = arith.constant 0 : index
    %64 = vector.load %arg9[%c0_24, %c0_25, %c0_26] : memref<8x32x8xbf16, #tpu.memory_space<vmem>>, vector<8x32x8xbf16>
    "tpu.trace_start"() <{level = 10 : i32, message = "hqd,hdf->hqf"}> : () -> ()
    %cst_27 = arith.constant dense<0.000000e+00> : vector<8x16x8xf32>
    %65 = tpu.matmul %61, %64, %cst_27 {dimension_numbers = #tpu.dot_dimension_numbers<[2], [1], [1], [2], [0, 0, 0, 1, 1, 2], [0], [0]>} : vector<8x16x32xbf16>, vector<8x32x8xbf16>, vector<8x16x8xf32> -> vector<8x16x8xf32>
    "tpu.trace_stop"() : () -> ()
    %66 = vector.extract_strided_slice %65 {offsets = [0, 0, 0], sizes = [4, 16, 8], strides = [1, 1, 1]} : vector<8x16x8xf32> to vector<4x16x8xf32>
    %67 = vector.extract_strided_slice %65 {offsets = [4, 0, 0], sizes = [4, 16, 8], strides = [1, 1, 1]} : vector<8x16x8xf32> to vector<4x16x8xf32>
    %c0_28 = arith.constant 0 : index
    %c0_29 = arith.constant 0 : index
    %c0_30 = arith.constant 0 : index
    %68 = vector.load %arg11[%c0_28, %c0_29, %c0_30] : memref<4x1x8xf32, #tpu.memory_space<vmem>>, vector<4x1x8xf32>
    %69 = vector.broadcast %68 : vector<4x1x8xf32> to vector<4x16x8xf32>
    %70 = arith.addf %67, %69 : vector<4x16x8xf32>
    %c0_31 = arith.constant 0 : index
    %c0_32 = arith.constant 0 : index
    %c0_33 = arith.constant 0 : index
    %71 = vector.load %arg8[%c0_31, %c0_32, %c0_33] : memref<4x1x8xf32, #tpu.memory_space<vmem>>, vector<4x1x8xf32>
    %c0_34 = arith.constant 0 : index
    %c0_35 = arith.constant 0 : index
    %c0_36 = arith.constant 0 : index
    %72 = vector.load %arg10[%c0_34, %c0_35, %c0_36] : memref<4x1x8xf32, #tpu.memory_space<vmem>>, vector<4x1x8xf32>
    %c0_37 = arith.constant 0 : index
    %c0_38 = arith.constant 0 : index
    %c0_39 = arith.constant 0 : index
    %73 = vector.load %arg12[%c0_37, %c0_38, %c0_39] : memref<4x8x32xbf16, #tpu.memory_space<vmem>>, vector<4x8x32xbf16>
    %74 = vector.broadcast %71 : vector<4x1x8xf32> to vector<4x8x8xf32>
    %75 = arith.addf %63, %74 : vector<4x8x8xf32>
    %76 = arith.truncf %75 : vector<4x8x8xf32> to vector<4x8x8xbf16>
    %77 = vector.broadcast %72 : vector<4x1x8xf32> to vector<4x16x8xf32>
    %78 = arith.addf %66, %77 : vector<4x16x8xf32>
    %79 = arith.truncf %78 : vector<4x16x8xf32> to vector<4x16x8xbf16>
    %80 = arith.truncf %70 : vector<4x16x8xf32> to vector<4x16x8xbf16>
    "tpu.trace_start"() <{level = 10 : i32, message = "hqd,hkd->hqk"}> : () -> ()
    %cst_40 = arith.constant dense<0.000000e+00> : vector<4x8x16xf32>
    %81 = tpu.matmul %76, %79, %cst_40 {dimension_numbers = #tpu.dot_dimension_numbers<[2], [2], [1], [1], [0, 0, 0, 1, 1, 1], [0], [0]>} : vector<4x8x8xbf16>, vector<4x16x8xbf16>, vector<4x8x16xf32> -> vector<4x8x16xf32>
    "tpu.trace_stop"() : () -> ()
    %cst_41 = arith.constant dense<0xFF800000> : vector<4x8xf32>
    %82 = vector.multi_reduction <maximumf>, %81, %cst_41 [2] : vector<4x8x16xf32> to vector<4x8xf32>
    %83 = vector.shape_cast %82 : vector<4x8xf32> to vector<4x8x1xf32>
    %84 = vector.broadcast %83 : vector<4x8x1xf32> to vector<4x8x16xf32>
    %85 = arith.subf %81, %84 : vector<4x8x16xf32>
    %86 = math.exp %85 : vector<4x8x16xf32>
    %cst_42 = arith.constant dense<0.000000e+00> : vector<4x8xf32>
    %87 = vector.multi_reduction <add>, %86, %cst_42 [2] : vector<4x8x16xf32> to vector<4x8xf32>
    %88 = vector.shape_cast %87 : vector<4x8xf32> to vector<4x8x1xf32>
    %89 = tpu.reciprocal %88 {approx = true} : vector<4x8x1xf32> -> vector<4x8x1xf32>
    %90 = vector.broadcast %89 : vector<4x8x1xf32> to vector<4x8x16xf32>
    %91 = arith.mulf %86, %90 : vector<4x8x16xf32>
    %92 = arith.truncf %91 : vector<4x8x16xf32> to vector<4x8x16xbf16>
    "tpu.trace_start"() <{level = 10 : i32, message = "hqk,hkd->hqd"}> : () -> ()
    %cst_43 = arith.constant dense<0.000000e+00> : vector<4x8x8xf32>
    %93 = tpu.matmul %92, %80, %cst_43 {dimension_numbers = #tpu.dot_dimension_numbers<[2], [1], [1], [2], [0, 0, 0, 1, 1, 2], [0], [0]>} : vector<4x8x16xbf16>, vector<4x16x8xbf16>, vector<4x8x8xf32> -> vector<4x8x8xf32>
    "tpu.trace_stop"() : () -> ()
    %94 = arith.truncf %93 : vector<4x8x8xf32> to vector<4x8x8xbf16>
    "tpu.trace_start"() <{level = 10 : i32, message = "hqd,hdf->hqf"}> : () -> ()
    %cst_44 = arith.constant dense<0.000000e+00> : vector<4x8x32xf32>
    %95 = tpu.matmul %94, %73, %cst_44 {dimension_numbers = #tpu.dot_dimension_numbers<[2], [1], [1], [2], [0, 0, 0, 1, 1, 2], [0], [0]>} : vector<4x8x8xbf16>, vector<4x8x32xbf16>, vector<4x8x32xf32> -> vector<4x8x32xf32>
    "tpu.trace_stop"() : () -> ()
    %cst_45 = arith.constant dense<0.000000e+00> : vector<8x32xf32>
    %96 = vector.multi_reduction <add>, %95, %cst_45 [0] : vector<4x8x32xf32> to vector<8x32xf32>
    %97 = arith.addf %0, %96 : vector<8x32xf32>
    %c0_46 = arith.constant 0 : index
    %c0_47 = arith.constant 0 : index
    %98 = vector.load %arg13[%c0_46, %c0_47] : memref<1x32xf32, #tpu.memory_space<vmem>>, vector<1x32xf32>
    %99 = vector.broadcast %98 : vector<1x32xf32> to vector<8x32xf32>
    %100 = arith.addf %97, %99 : vector<8x32xf32>
    %cst_48 = arith.constant dense<0.000000e+00> : vector<8xf32>
    %101 = vector.multi_reduction <add>, %100, %cst_48 [1] : vector<8x32xf32> to vector<8xf32>
    %102 = vector.shape_cast %101 : vector<8xf32> to vector<8x1xf32>
    %cst_49 = arith.constant 3.200000e+01 : f32
    %103 = vector.broadcast %cst_49 : f32 to vector<8x1xf32>
    %104 = arith.divf %102, %103 : vector<8x1xf32>
    %105 = vector.broadcast %104 : vector<8x1xf32> to vector<8x32xf32>
    %106 = arith.subf %100, %105 : vector<8x32xf32>
    %107 = vector.broadcast %104 : vector<8x1xf32> to vector<8x32xf32>
    %108 = arith.subf %100, %107 : vector<8x32xf32>
    %109 = arith.mulf %106, %108 : vector<8x32xf32>
    %cst_50 = arith.constant dense<0.000000e+00> : vector<8xf32>
    %110 = vector.multi_reduction <add>, %109, %cst_50 [1] : vector<8x32xf32> to vector<8xf32>
    %111 = vector.shape_cast %110 : vector<8xf32> to vector<8x1xf32>
    %cst_51 = arith.constant 3.200000e+01 : f32
    %112 = vector.broadcast %cst_51 : f32 to vector<8x1xf32>
    %113 = arith.divf %111, %112 : vector<8x1xf32>
    %114 = vector.broadcast %104 : vector<8x1xf32> to vector<8x32xf32>
    %115 = arith.subf %100, %114 : vector<8x32xf32>
    %cst_52 = arith.constant 9.99999974E-6 : f32
    %116 = vector.broadcast %cst_52 : f32 to vector<8x1xf32>
    %117 = arith.addf %113, %116 : vector<8x1xf32>
    %118 = math.rsqrt %117 : vector<8x1xf32>
    %119 = vector.broadcast %118 : vector<8x1xf32> to vector<8x32xf32>
    %120 = arith.mulf %115, %119 : vector<8x32xf32>
    %c0_53 = arith.constant 0 : index
    %c0_54 = arith.constant 0 : index
    %121 = vector.load %arg5[%c0_53, %c0_54] : memref<1x32xf32, #tpu.memory_space<vmem>>, vector<1x32xf32>
    %122 = vector.broadcast %121 : vector<1x32xf32> to vector<8x32xf32>
    %123 = arith.mulf %120, %122 : vector<8x32xf32>
    %c0_55 = arith.constant 0 : index
    %c0_56 = arith.constant 0 : index
    %124 = vector.load %arg6[%c0_55, %c0_56] : memref<1x32xf32, #tpu.memory_space<vmem>>, vector<1x32xf32>
    %125 = vector.broadcast %124 : vector<1x32xf32> to vector<8x32xf32>
    %126 = arith.addf %123, %125 : vector<8x32xf32>
    %127 = arith.truncf %126 : vector<8x32xf32> to vector<8x32xbf16>
    %c0_57 = arith.constant 0 : index
    %c0_58 = arith.constant 0 : index
    %128 = vector.load %arg14[%c0_57, %c0_58] : memref<32x128xbf16, #tpu.memory_space<vmem>>, vector<32x128xbf16>
    %cst_59 = arith.constant dense<0.000000e+00> : vector<8x128xf32>
    %129 = tpu.matmul %127, %128, %cst_59 {dimension_numbers = #tpu.dot_dimension_numbers<[1], [0], [0], [1], [0, 0, 1, 1], [], []>} : vector<8x32xbf16>, vector<32x128xbf16>, vector<8x128xf32> -> vector<8x128xf32>
    %c0_60 = arith.constant 0 : index
    %c0_61 = arith.constant 0 : index
    %130 = vector.load %arg15[%c0_60, %c0_61] : memref<1x128xf32, #tpu.memory_space<vmem>>, vector<1x128xf32>
    %131 = vector.broadcast %130 : vector<1x128xf32> to vector<8x128xf32>
    %132 = arith.addf %129, %131 : vector<8x128xf32>
    %cst_62 = arith.constant 0.000000e+00 : f32
    %133 = vector.broadcast %cst_62 : f32 to vector<8x128xf32>
    %134 = arith.maximumf %132, %133 : vector<8x128xf32>
    %135 = arith.truncf %134 : vector<8x128xf32> to vector<8x128xbf16>
    %c0_63 = arith.constant 0 : index
    %c0_64 = arith.constant 0 : index
    %136 = vector.load %arg16[%c0_63, %c0_64] : memref<128x32xbf16, #tpu.memory_space<vmem>>, vector<128x32xbf16>
    %cst_65 = arith.constant dense<0.000000e+00> : vector<8x32xf32>
    %137 = tpu.matmul %135, %136, %cst_65 {dimension_numbers = #tpu.dot_dimension_numbers<[1], [0], [0], [1], [0, 0, 1, 1], [], []>} : vector<8x128xbf16>, vector<128x32xbf16>, vector<8x32xf32> -> vector<8x32xf32>
    %c0_66 = arith.constant 0 : index
    %c0_67 = arith.constant 0 : index
    %138 = vector.load %arg17[%c0_66, %c0_67] : memref<1x32xf32, #tpu.memory_space<vmem>>, vector<1x32xf32>
    %139 = vector.broadcast %138 : vector<1x32xf32> to vector<8x32xf32>
    %140 = arith.addf %137, %139 : vector<8x32xf32>
    %141 = arith.addf %100, %140 : vector<8x32xf32>
    %c0_68 = arith.constant 0 : index
    %c0_69 = arith.constant 0 : index
    %142 = vector.load %arg18[%c0_68, %c0_69] : memref<8x32xf32, #tpu.memory_space<vmem>>, vector<8x32xf32>
    tpu.vector_store %arg18[%c0_68, %c0_69], %141 {strides = array<i32>} : memref<8x32xf32, #tpu.memory_space<vmem>>, vector<8x32xf32>,
    return
  }
  func.func @transform_0(%arg0: i32) -> (i32, i32) {
    %c0_i32 = arith.constant 0 : i32
    %c0_i32_0 = arith.constant 0 : i32
    return %arg0, %c0_i32 : i32, i32
  }
  func.func @transform_1(%arg0: i32) -> (i32, i32) {
    %c0_i32 = arith.constant 0 : i32
    %c0_i32_0 = arith.constant 0 : i32
    return %arg0, %c0_i32 : i32, i32
  }
  func.func @transform_2(%arg0: i32) -> (i32, i32) {
    %c0_i32 = arith.constant 0 : i32
    %c0_i32_0 = arith.constant 0 : i32
    %c0_i32_1 = arith.constant 0 : i32
    return %c0_i32, %c0_i32_0 : i32, i32
  }
  func.func @transform_3(%arg0: i32) -> (i32, i32) {
    %c0_i32 = arith.constant 0 : i32
    %c0_i32_0 = arith.constant 0 : i32
    %c0_i32_1 = arith.constant 0 : i32
    return %c0_i32, %c0_i32_0 : i32, i32
  }
  func.func @transform_4(%arg0: i32) -> (i32, i32) {
    %c0_i32 = arith.constant 0 : i32
    %c0_i32_0 = arith.constant 0 : i32
    %c0_i32_1 = arith.constant 0 : i32
    return %c0_i32, %c0_i32_0 : i32, i32
  }
  func.func @transform_5(%arg0: i32) -> (i32, i32) {
    %c0_i32 = arith.constant 0 : i32
    %c0_i32_0 = arith.constant 0 : i32
    %c0_i32_1 = arith.constant 0 : i32
    return %c0_i32, %c0_i32_0 : i32, i32
  }
  func.func @transform_6(%arg0: i32) -> (i32, i32, i32) {
    %c0_i32 = arith.constant 0 : i32
    %c0_i32_0 = arith.constant 0 : i32
    %c0_i32_1 = arith.constant 0 : i32
    %c0_i32_2 = arith.constant 0 : i32
    return %c0_i32, %c0_i32_0, %c0_i32_1 : i32, i32, i32
  }
  func.func @transform_7(%arg0: i32) -> (i32, i32, i32) {
    %c0_i32 = arith.constant 0 : i32
    %c0_i32_0 = arith.constant 0 : i32
    %c0_i32_1 = arith.constant 0 : i32
    %c0_i32_2 = arith.constant 0 : i32
    return %c0_i32, %c0_i32_0, %c0_i32_1 : i32, i32, i32
  }
  func.func @transform_8(%arg0: i32) -> (i32, i32, i32) {
    %c0_i32 = arith.constant 0 : i32
    %c0_i32_0 = arith.constant 0 : i32
    %c0_i32_1 = arith.constant 0 : i32
    %c0_i32_2 = arith.constant 0 : i32
    return %c0_i32, %c0_i32_0, %c0_i32_1 : i32, i32, i32
  }
  func.func @transform_9(%arg0: i32) -> (i32, i32, i32) {
    %c0_i32 = arith.constant 0 : i32
    %c0_i32_0 = arith.constant 0 : i32
    %c0_i32_1 = arith.constant 0 : i32
    %c0_i32_2 = arith.constant 0 : i32
    return %c0_i32, %c0_i32_0, %c0_i32_1 : i32, i32, i32
  }
  func.func @transform_10(%arg0: i32) -> (i32, i32, i32) {
    %c0_i32 = arith.constant 0 : i32
    %c0_i32_0 = arith.constant 0 : i32
    %c0_i32_1 = arith.constant 0 : i32
    %c0_i32_2 = arith.constant 0 : i32
    return %c0_i32, %c0_i32_0, %c0_i32_1 : i32, i32, i32
  }
  func.func @transform_11(%arg0: i32) -> (i32, i32, i32) {
    %c0_i32 = arith.constant 0 : i32
    %c0_i32_0 = arith.constant 0 : i32
    %c0_i32_1 = arith.constant 0 : i32
    %c0_i32_2 = arith.constant 0 : i32
    return %c0_i32, %c0_i32_0, %c0_i32_1 : i32, i32, i32
  }
  func.func @transform_12(%arg0: i32) -> (i32, i32) {
    %c0_i32 = arith.constant 0 : i32
    %c0_i32_0 = arith.constant 0 : i32
    %c0_i32_1 = arith.constant 0 : i32
    return %c0_i32, %c0_i32_0 : i32, i32
  }
  func.func @transform_13(%arg0: i32) -> (i32, i32) {
    %c0_i32 = arith.constant 0 : i32
    %c0_i32_0 = arith.constant 0 : i32
    %c0_i32_1 = arith.constant 0 : i32
    return %c0_i32, %c0_i32_0 : i32, i32
  }
  func.func @transform_14(%arg0: i32) -> (i32, i32) {
    %c0_i32 = arith.constant 0 : i32
    %c0_i32_0 = arith.constant 0 : i32
    %c0_i32_1 = arith.constant 0 : i32
    return %c0_i32, %c0_i32_0 : i32, i32
  }
  func.func @transform_15(%arg0: i32) -> (i32, i32) {
    %c0_i32 = arith.constant 0 : i32
    %c0_i32_0 = arith.constant 0 : i32
    %c0_i32_1 = arith.constant 0 : i32
    return %c0_i32, %c0_i32_0 : i32, i32
  }
  func.func @transform_16(%arg0: i32) -> (i32, i32) {
    %c0_i32 = arith.constant 0 : i32
    %c0_i32_0 = arith.constant 0 : i32
    %c0_i32_1 = arith.constant 0 : i32
    return %c0_i32, %c0_i32_0 : i32, i32
  }
  func.func @transform_17(%arg0: i32) -> (i32, i32) {
    %c0_i32 = arith.constant 0 : i32
    %c0_i32_0 = arith.constant 0 : i32
    return %arg0, %c0_i32 : i32, i32
  }
}

module attributes {stable_mosaic.version = 11 : i64} {
  func.func @kernel(%arg0: i32, %arg1: memref<8x32xf32, #tpu.memory_space<vmem>>, %arg2: memref<16x32xf32, #tpu.memory_space<vmem>>, %arg3: memref<1x32xf32, #tpu.memory_space<vmem>>, %arg4: memref<1x32xf32, #tpu.memory_space<vmem>>, %arg5: memref<1x32xf32, #tpu.memory_space<vmem>>, %arg6: memref<1x32xf32, #tpu.memory_space<vmem>>, %arg7: memref<4x32x8xbf16, #tpu.memory_space<vmem>>, %arg8: memref<4x1x8xf32, #tpu.memory_space<vmem>>, %arg9: memref<8x32x8xbf16, #tpu.memory_space<vmem>>, %arg10: memref<4x1x8xf32, #tpu.memory_space<vmem>>, %arg11: memref<4x1x8xf32, #tpu.memory_space<vmem>>, %arg12: memref<4x8x32xbf16, #tpu.memory_space<vmem>>, %arg13: memref<1x32xf32, #tpu.memory_space<vmem>>, %arg14: memref<32x128xbf16, #tpu.memory_space<vmem>>, %arg15: memref<1x128xf32, #tpu.memory_space<vmem>>, %arg16: memref<128x32xbf16, #tpu.memory_space<vmem>>, %arg17: memref<1x32xf32, #tpu.memory_space<vmem>>, %arg18: memref<8x32xf32, #tpu.memory_space<vmem>>) attributes {dimension_semantics = [#tpu.dimension_semantics<parallel>], iteration_bounds = array<i64: 2>, scalar_prefetch = 0 : i64, scratch_operands = 0 : i64, tpu.core_type = #tpu.core_type<tc>, window_params = [{transform_indices = @transform_0, window_bounds = array<i64: 8, 32>}, {transform_indices = @transform_1, window_bounds = array<i64: 16, 32>}, {pipeline_mode = #tpu.pipeline_mode<synchronous>, transform_indices = @transform_2, window_bounds = array<i64: 1, 32>}, {pipeline_mode = #tpu.pipeline_mode<synchronous>, transform_indices = @transform_3, window_bounds = array<i64: 1, 32>}, {pipeline_mode = #tpu.pipeline_mode<synchronous>, transform_indices = @transform_4, window_bounds = array<i64: 1, 32>}, {pipeline_mode = #tpu.pipeline_mode<synchronous>, transform_indices = @transform_5, window_bounds = array<i64: 1, 32>}, {pipeline_mode = #tpu.pipeline_mode<synchronous>, transform_indices = @transform_6, window_bounds = array<i64: 4, 32, 8>}, {pipeline_mode = #tpu.pipeline_mode<synchronous>, transform_indices = @transform_7, window_bounds = array<i64: 4, 1, 8>}, {pipeline_mode = #tpu.pipeline_mode<synchronous>, transform_indices = @transform_8, window_bounds = array<i64: 8, 32, 8>}, {pipeline_mode = #tpu.pipeline_mode<synchronous>, transform_indices = @transform_9, window_bounds = array<i64: 4, 1, 8>}, {pipeline_mode = #tpu.pipeline_mode<synchronous>, transform_indices = @transform_10, window_bounds = array<i64: 4, 1, 8>}, {pipeline_mode = #tpu.pipeline_mode<synchronous>, transform_indices = @transform_11, window_bounds = array<i64: 4, 8, 32>}, {pipeline_mode = #tpu.pipeline_mode<synchronous>, transform_indices = @transform_12, window_bounds = array<i64: 1, 32>}, {pipeline_mode = #tpu.pipeline_mode<synchronous>, transform_indices = @transform_13, window_bounds = array<i64: 32, 128>}, {pipeline_mode = #tpu.pipeline_mode<synchronous>, transform_indices = @transform_14, window_bounds = array<i64: 1, 128>}, {pipeline_mode = #tpu.pipeline_mode<synchronous>, transform_indices = @transform_15, window_bounds = array<i64: 128, 32>}, {pipeline_mode = #tpu.pipeline_mode<synchronous>, transform_indices = @transform_16, window_bounds = array<i64: 1, 32>}, {transform_indices = @transform_17, window_bounds = array<i64: 8, 32>}]} {
    %c0 = arith.constant 0 : index
    %c0_0 = arith.constant 0 : index
    %0 = vector.load %arg1[%c0, %c0_0] : memref<8x32xf32, #tpu.memory_space<vmem>>, vector<8x32xf32>
    %c0_1 = arith.constant 0 : index
    %c0_2 = arith.constant 0 : index
    %1 = vector.load %arg2[%c0_1, %c0_2] : memref<16x32xf32, #tpu.memory_space<vmem>>, vector<16x32xf32>
    %cst = arith.constant dense<0.000000e+00> : vector<8xf32>
    %2 = vector.multi_reduction <add>, %0, %cst [1] : vector<8x32xf32> to vector<8xf32>
    %3 = vector.shape_cast %2 : vector<8xf32> to vector<8x1xf32>
    %cst_3 = arith.constant 3.200000e+01 : f32
    %4 = vector.broadcast %cst_3 : f32 to vector<8x1xf32>
    %5 = arith.divf %3, %4 : vector<8x1xf32>
    %6 = vector.broadcast %5 : vector<8x1xf32> to vector<8x32xf32>
    %7 = arith.subf %0, %6 : vector<8x32xf32>
    %8 = vector.broadcast %5 : vector<8x1xf32> to vector<8x32xf32>
    %9 = arith.subf %0, %8 : vector<8x32xf32>
    %10 = arith.mulf %7, %9 : vector<8x32xf32>
    %cst_4 = arith.constant dense<0.000000e+00> : vector<8xf32>
    %11 = vector.multi_reduction <add>, %10, %cst_4 [1] : vector<8x32xf32> to vector<8xf32>
    %12 = vector.shape_cast %11 : vector<8xf32> to vector<8x1xf32>
    %cst_5 = arith.constant 3.200000e+01 : f32
    %13 = vector.broadcast %cst_5 : f32 to vector<8x1xf32>
    %14 = arith.divf %12, %13 : vector<8x1xf32>
    %15 = vector.broadcast %5 : vector<8x1xf32> to vector<8x32xf32>
    %16 = arith.subf %0, %15 : vector<8x32xf32>
    %cst_6 = arith.constant 9.99999974E-6 : f32
    %17 = vector.broadcast %cst_6 : f32 to vector<8x1xf32>
    %18 = arith.addf %14, %17 : vector<8x1xf32>
    %19 = math.rsqrt %18 : vector<8x1xf32>
    %20 = vector.broadcast %19 : vector<8x1xf32> to vector<8x32xf32>
    %21 = arith.mulf %16, %20 : vector<8x32xf32>
    %c0_7 = arith.constant 0 : index
    %c0_8 = arith.constant 0 : index
    %22 = vector.load %arg3[%c0_7, %c0_8] : memref<1x32xf32, #tpu.memory_space<vmem>>, vector<1x32xf32>
    %23 = vector.broadcast %22 : vector<1x32xf32> to vector<8x32xf32>
    %24 = arith.mulf %21, %23 : vector<8x32xf32>
    %c0_9 = arith.constant 0 : index
    %c0_10 = arith.constant 0 : index
    %25 = vector.load %arg4[%c0_9, %c0_10] : memref<1x32xf32, #tpu.memory_space<vmem>>, vector<1x32xf32>
    %26 = vector.broadcast %25 : vector<1x32xf32> to vector<8x32xf32>
    %27 = arith.addf %24, %26 : vector<8x32xf32>
    %cst_11 = arith.constant dense<0.000000e+00> : vector<16xf32>
    %28 = vector.multi_reduction <add>, %1, %cst_11 [1] : vector<16x32xf32> to vector<16xf32>
    %29 = vector.shape_cast %28 : vector<16xf32> to vector<16x1xf32>
    %cst_12 = arith.constant 3.200000e+01 : f32
    %30 = vector.broadcast %cst_12 : f32 to vector<16x1xf32>
    %31 = arith.divf %29, %30 : vector<16x1xf32>
    %32 = vector.broadcast %31 : vector<16x1xf32> to vector<16x32xf32>
    %33 = arith.subf %1, %32 : vector<16x32xf32>
    %34 = vector.broadcast %31 : vector<16x1xf32> to vector<16x32xf32>
    %35 = arith.subf %1, %34 : vector<16x32xf32>
    %36 = arith.mulf %33, %35 : vector<16x32xf32>
    %cst_13 = arith.constant dense<0.000000e+00> : vector<16xf32>
    %37 = vector.multi_reduction <add>, %36, %cst_13 [1] : vector<16x32xf32> to vector<16xf32>
    %38 = vector.shape_cast %37 : vector<16xf32> to vector<16x1xf32>
    %cst_14 = arith.constant 3.200000e+01 : f32
    %39 = vector.broadcast %cst_14 : f32 to vector<16x1xf32>
    %40 = arith.divf %38, %39 : vector<16x1xf32>
    %41 = vector.broadcast %31 : vector<16x1xf32> to vector<16x32xf32>
    %42 = arith.subf %1, %41 : vector<16x32xf32>
    %cst_15 = arith.constant 9.99999974E-6 : f32
    %43 = vector.broadcast %cst_15 : f32 to vector<16x1xf32>
    %44 = arith.addf %40, %43 : vector<16x1xf32>
    %45 = math.rsqrt %44 : vector<16x1xf32>
    %46 = vector.broadcast %45 : vector<16x1xf32> to vector<16x32xf32>
    %47 = arith.mulf %42, %46 : vector<16x32xf32>
    %c0_16 = arith.constant 0 : index
    %c0_17 = arith.constant 0 : index
    %48 = vector.load %arg5[%c0_16, %c0_17] : memref<1x32xf32, #tpu.memory_space<vmem>>, vector<1x32xf32>
    %49 = vector.broadcast %48 : vector<1x32xf32> to vector<16x32xf32>
    %50 = arith.mulf %47, %49 : vector<16x32xf32>
    %c0_18 = arith.constant 0 : index
    %c0_19 = arith.constant 0 : index
    %51 = vector.load %arg6[%c0_18, %c0_19] : memref<1x32xf32, #tpu.memory_space<vmem>>, vector<1x32xf32>
    %52 = vector.broadcast %51 : vector<1x32xf32> to vector<16x32xf32>
    %53 = arith.addf %50, %52 : vector<16x32xf32>
    %54 = arith.truncf %27 : vector<8x32xf32> to vector<8x32xbf16>
    %55 = vector.shape_cast %54 : vector<8x32xbf16> to vector<1x8x32xbf16>
    %56 = vector.shape_cast %55 : vector<1x8x32xbf16> to vector<1x8x32xbf16>
    %57 = vector.broadcast %56 : vector<1x8x32xbf16> to vector<4x8x32xbf16>
    %58 = arith.truncf %53 : vector<16x32xf32> to vector<16x32xbf16>
    %59 = vector.shape_cast %58 : vector<16x32xbf16> to vector<1x16x32xbf16>
    %60 = vector.shape_cast %59 : vector<1x16x32xbf16> to vector<1x16x32xbf16>
    %61 = vector.broadcast %60 : vector<1x16x32xbf16> to vector<8x16x32xbf16>
    %c0_20 = arith.constant 0 : index
    %c0_21 = arith.constant 0 : index
    %c0_22 = arith.constant 0 : index
    %62 = vector.load %arg7[%c0_20, %c0_21, %c0_22] : memref<4x32x8xbf16, #tpu.memory_space<vmem>>, vector<4x32x8xbf16>
    "tpu.trace_start"() <{level = 10 : i32, message = "hqd,hdf->hqf"}> : () -> ()
    %cst_23 = arith.constant dense<0.000000e+00> : vector<4x8x8xf32>
    %63 = tpu.matmul %57, %62, %cst_23 {dimension_numbers = #tpu.dot_dimension_numbers<[2], [1], [1], [2], [0, 0, 0, 1, 1, 2], [0], [0]>} : vector<4x8x32xbf16>, vector<4x32x8xbf16>, vector<4x8x8xf32> -> vector<4x8x8xf32>
    "tpu.trace_stop"() : () -> ()
    %c0_24 = arith.constant 0 : index
    %c0_25 = arith.constant 0 : index
    %c0_26 = arith.constant 0 : index
    %64 = vector.load %arg9[%c0_24, %c0_25, %c0_26] : memref<8x32x8xbf16, #tpu.memory_space<vmem>>, vector<8x32x8xbf16>
    "tpu.trace_start"() <{level = 10 : i32, message = "hqd,hdf->hqf"}> : () -> ()
    %cst_27 = arith.constant dense<0.000000e+00> : vector<8x16x8xf32>
    %65 = tpu.matmul %61, %64, %cst_27 {dimension_numbers = #tpu.dot_dimension_numbers<[2], [1], [1], [2], [0, 0, 0, 1, 1, 2], [0], [0]>} : vector<8x16x32xbf16>, vector<8x32x8xbf16>, vector<8x16x8xf32> -> vector<8x16x8xf32>
    "tpu.trace_stop"() : () -> ()
    %66 = vector.extract_strided_slice %65 {offsets = [0, 0, 0], sizes = [4, 16, 8], strides = [1, 1, 1]} : vector<8x16x8xf32> to vector<4x16x8xf32>
    %67 = vector.extract_strided_slice %65 {offsets = [4, 0, 0], sizes = [4, 16, 8], strides = [1, 1, 1]} : vector<8x16x8xf32> to vector<4x16x8xf32>
    %c0_28 = arith.constant 0 : index
    %c0_29 = arith.constant 0 : index
    %c0_30 = arith.constant 0 : index
    %68 = vector.load %arg11[%c0_28, %c0_29, %c0_30] : memref<4x1x8xf32, #tpu.memory_space<vmem>>, vector<4x1x8xf32>
    %69 = vector.broadcast %68 : vector<4x1x8xf32> to vector<4x16x8xf32>
    %70 = arith.addf %67, %69 : vector<4x16x8xf32>
    %c0_31 = arith.constant 0 : index
    %c0_32 = arith.constant 0 : index
    %c0_33 = arith.constant 0 : index
    %71 = vector.load %arg8[%c0_31, %c0_32, %c0_33] : memref<4x1x8xf32, #tpu.memory_space<vmem>>, vector<4x1x8xf32>
    %c0_34 = arith.constant 0 : index
    %c0_35 = arith.constant 0 : index
    %c0_36 = arith.constant 0 : index
    %72 = vector.load %arg10[%c0_34, %c0_35, %c0_36] : memref<4x1x8xf32, #tpu.memory_space<vmem>>, vector<4x1x8xf32>
    %c0_37 = arith.constant 0 : index
    %c0_38 = arith.constant 0 : index
    %c0_39 = arith.constant 0 : index
    %73 = vector.load %arg12[%c0_37, %c0_38, %c0_39] : memref<4x8x32xbf16, #tpu.memory_space<vmem>>, vector<4x8x32xbf16>
    %74 = vector.broadcast %71 : vector<4x1x8xf32> to vector<4x8x8xf32>
    %75 = arith.addf %63, %74 : vector<4x8x8xf32>
    %76 = arith.truncf %75 : vector<4x8x8xf32> to vector<4x8x8xbf16>
    %77 = vector.broadcast %72 : vector<4x1x8xf32> to vector<4x16x8xf32>
    %78 = arith.addf %66, %77 : vector<4x16x8xf32>
    %79 = arith.truncf %78 : vector<4x16x8xf32> to vector<4x16x8xbf16>
    %80 = arith.truncf %70 : vector<4x16x8xf32> to vector<4x16x8xbf16>
    "tpu.trace_start"() <{level = 10 : i32, message = "hqd,hkd->hqk"}> : () -> ()
    %cst_40 = arith.constant dense<0.000000e+00> : vector<4x8x16xf32>
    %81 = tpu.matmul %76, %79, %cst_40 {dimension_numbers = #tpu.dot_dimension_numbers<[2], [2], [1], [1], [0, 0, 0, 1, 1, 1], [0], [0]>} : vector<4x8x8xbf16>, vector<4x16x8xbf16>, vector<4x8x16xf32> -> vector<4x8x16xf32>
    "tpu.trace_stop"() : () -> ()
    %cst_41 = arith.constant dense<0xFF800000> : vector<4x8xf32>
    %82 = vector.multi_reduction <maximumf>, %81, %cst_41 [2] : vector<4x8x16xf32> to vector<4x8xf32>
    %83 = vector.shape_cast %82 : vector<4x8xf32> to vector<4x8x1xf32>
    %84 = vector.broadcast %83 : vector<4x8x1xf32> to vector<4x8x16xf32>
    %85 = arith.subf %81, %84 : vector<4x8x16xf32>
    %86 = math.exp %85 : vector<4x8x16xf32>
    %cst_42 = arith.constant dense<0.000000e+00> : vector<4x8xf32>
    %87 = vector.multi_reduction <add>, %86, %cst_42 [2] : vector<4x8x16xf32> to vector<4x8xf32>
    %88 = vector.shape_cast %87 : vector<4x8xf32> to vector<4x8x1xf32>
    %89 = tpu.reciprocal %88 {approx = true} : vector<4x8x1xf32> -> vector<4x8x1xf32>
    %90 = vector.broadcast %89 : vector<4x8x1xf32> to vector<4x8x16xf32>
    %91 = arith.mulf %86, %90 : vector<4x8x16xf32>
    %92 = arith.truncf %91 : vector<4x8x16xf32> to vector<4x8x16xbf16>
    "tpu.trace_start"() <{level = 10 : i32, message = "hqk,hkd->hqd"}> : () -> ()
    %cst_43 = arith.constant dense<0.000000e+00> : vector<4x8x8xf32>
    %93 = tpu.matmul %92, %80, %cst_43 {dimension_numbers = #tpu.dot_dimension_numbers<[2], [1], [1], [2], [0, 0, 0, 1, 1, 2], [0], [0]>} : vector<4x8x16xbf16>, vector<4x16x8xbf16>, vector<4x8x8xf32> -> vector<4x8x8xf32>
    "tpu.trace_stop"() : () -> ()
    %94 = arith.truncf %93 : vector<4x8x8xf32> to vector<4x8x8xbf16>
    "tpu.trace_start"() <{level = 10 : i32, message = "hqd,hdf->hqf"}> : () -> ()
    %cst_44 = arith.constant dense<0.000000e+00> : vector<4x8x32xf32>
    %95 = tpu.matmul %94, %73, %cst_44 {dimension_numbers = #tpu.dot_dimension_numbers<[2], [1], [1], [2], [0, 0, 0, 1, 1, 2], [0], [0]>} : vector<4x8x8xbf16>, vector<4x8x32xbf16>, vector<4x8x32xf32> -> vector<4x8x32xf32>
    "tpu.trace_stop"() : () -> ()
    %cst_45 = arith.constant dense<0.000000e+00> : vector<8x32xf32>
    %96 = vector.multi_reduction <add>, %95, %cst_45 [0] : vector<4x8x32xf32> to vector<8x32xf32>
    %97 = arith.addf %0, %96 : vector<8x32xf32>
    %c0_46 = arith.constant 0 : index
    %c0_47 = arith.constant 0 : index
    %98 = vector.load %arg13[%c0_46, %c0_47] : memref<1x32xf32, #tpu.memory_space<vmem>>, vector<1x32xf32>
    %99 = vector.broadcast %98 : vector<1x32xf32> to vector<8x32xf32>
    %100 = arith.addf %97, %99 : vector<8x32xf32>
    %cst_48 = arith.constant dense<0.000000e+00> : vector<8xf32>
    %101 = vector.multi_reduction <add>, %100, %cst_48 [1] : vector<8x32xf32> to vector<8xf32>
    %102 = vector.shape_cast %101 : vector<8xf32> to vector<8x1xf32>
    %cst_49 = arith.constant 3.200000e+01 : f32
    %103 = vector.broadcast %cst_49 : f32 to vector<8x1xf32>
    %104 = arith.divf %102, %103 : vector<8x1xf32>
    %105 = vector.broadcast %104 : vector<8x1xf32> to vector<8x32xf32>
    %106 = arith.subf %100, %105 : vector<8x32xf32>
    %107 = vector.broadcast %104 : vector<8x1xf32> to vector<8x32xf32>
    %108 = arith.subf %100, %107 : vector<8x32xf32>
    %109 = arith.mulf %106, %108 : vector<8x32xf32>
    %cst_50 = arith.constant dense<0.000000e+00> : vector<8xf32>
    %110 = vector.multi_reduction <add>, %109, %cst_50 [1] : vector<8x32xf32> to vector<8xf32>
    %111 = vector.shape_cast %110 : vector<8xf32> to vector<8x1xf32>
    %cst_51 = arith.constant 3.200000e+01 : f32
    %112 = vector.broadcast %cst_51 : f32 to vector<8x1xf32>
    %113 = arith.divf %111, %112 : vector<8x1xf32>
    %114 = vector.broadcast %104 : vector<8x1xf32> to vector<8x32xf32>
    %115 = arith.subf %100, %114 : vector<8x32xf32>
    %cst_52 = arith.constant 9.99999974E-6 : f32
    %116 = vector.broadcast %cst_52 : f32 to vector<8x1xf32>
    %117 = arith.addf %113, %116 : vector<8x1xf32>
    %118 = math.rsqrt %117 : vector<8x1xf32>
    %119 = vector.broadcast %118 : vector<8x1xf32> to vector<8x32xf32>
    %120 = arith.mulf %115, %119 : vector<8x32xf32>
    %c0_53 = arith.constant 0 : index
    %c0_54 = arith.constant 0 : index
    %121 = vector.load %arg5[%c0_53, %c0_54] : memref<1x32xf32, #tpu.memory_space<vmem>>, vector<1x32xf32>
    %122 = vector.broadcast %121 : vector<1x32xf32> to vector<8x32xf32>
    %123 = arith.mulf %120, %122 : vector<8x32xf32>
    %c0_55 = arith.constant 0 : index
    %c0_56 = arith.constant 0 : index
    %124 = vector.load %arg6[%c0_55, %c0_56] : memref<1x32xf32, #tpu.memory_space<vmem>>, vector<1x32xf32>
    %125 = vector.broadcast %124 : vector<1x32xf32> to vector<8x32xf32>
    %126 = arith.addf %123, %125 : vector<8x32xf32>
    %127 = arith.truncf %126 : vector<8x32xf32> to vector<8x32xbf16>
    %c0_57 = arith.constant 0 : index
    %c0_58 = arith.constant 0 : index
    %128 = vector.load %arg14[%c0_57, %c0_58] : memref<32x128xbf16, #tpu.memory_space<vmem>>, vector<32x128xbf16>
    %cst_59 = arith.constant dense<0.000000e+00> : vector<8x128xf32>
    %129 = tpu.matmul %127, %128, %cst_59 {dimension_numbers = #tpu.dot_dimension_numbers<[1], [0], [0], [1], [0, 0, 1, 1], [], []>} : vector<8x32xbf16>, vector<32x128xbf16>, vector<8x128xf32> -> vector<8x128xf32>
    %c0_60 = arith.constant 0 : index
    %c0_61 = arith.constant 0 : index
    %130 = vector.load %arg15[%c0_60, %c0_61] : memref<1x128xf32, #tpu.memory_space<vmem>>, vector<1x128xf32>
    %131 = vector.broadcast %130 : vector<1x128xf32> to vector<8x128xf32>
    %132 = arith.addf %129, %131 : vector<8x128xf32>
    %cst_62 = arith.constant 0.000000e+00 : f32
    %133 = vector.broadcast %cst_62 : f32 to vector<8x128xf32>
    %134 = arith.maximumf %132, %133 : vector<8x128xf32>
    %135 = arith.truncf %134 : vector<8x128xf32> to vector<8x128xbf16>
    %c0_63 = arith.constant 0 : index
    %c0_64 = arith.constant 0 : index
    %136 = vector.load %arg16[%c0_63, %c0_64] : memref<128x32xbf16, #tpu.memory_space<vmem>>, vector<128x32xbf16>
    %cst_65 = arith.constant dense<0.000000e+00> : vector<8x32xf32>
    %137 = tpu.matmul %135, %136, %cst_65 {dimension_numbers = #tpu.dot_dimension_numbers<[1], [0], [0], [1], [0, 0, 1, 1], [], []>} : vector<8x128xbf16>, vector<128x32xbf16>, vector<8x32xf32> -> vector<8x32xf32>
    %c0_66 = arith.constant 0 : index
    %c0_67 = arith.constant 0 : index
    %138 = vector.load %arg17[%c0_66, %c0_67] : memref<1x32xf32, #tpu.memory_space<vmem>>, vector<1x32xf32>
    %139 = vector.broadcast %138 : vector<1x32xf32> to vector<8x32xf32>
    %140 = arith.addf %137, %139 : vector<8x32xf32>
    %141 = arith.addf %100, %140 : vector<8x32xf32>
    %c0_68 = arith.constant 0 : index
    %c0_69 = arith.constant 0 : index
    %142 = vector.load %arg18[%c0_68, %c0_69] : memref<8x32xf32, #tpu.memory_space<vmem>>, vector<8x32xf32>
    tpu.vector_store %arg18[%c0_68, %c0_69], %141 {strides = array<i32>} : memref<8x32xf32, #tpu.memory_space<vmem>>, vector<8x32xf32>,
    return
  }
  func.func @transform_0(%arg0: i32) -> (i32, i32) {
    %c0_i32 = arith.constant 0 : i32
    %c0_i32_0 = arith.constant 0 : i32
    return %arg0, %c0_i32 : i32, i32
  }
  func.func @transform_1(%arg0: i32) -> (i32, i32) {
    %c0_i32 = arith.constant 0 : i32
    %c0_i32_0 = arith.constant 0 : i32
    return %arg0, %c0_i32 : i32, i32
  }
  func.func @transform_2(%arg0: i32) -> (i32, i32) {
    %c0_i32 = arith.constant 0 : i32
    %c0_i32_0 = arith.constant 0 : i32
    %c0_i32_1 = arith.constant 0 : i32
    return %c0_i32, %c0_i32_0 : i32, i32
  }
  func.func @transform_3(%arg0: i32) -> (i32, i32) {
    %c0_i32 = arith.constant 0 : i32
    %c0_i32_0 = arith.constant 0 : i32
    %c0_i32_1 = arith.constant 0 : i32
    return %c0_i32, %c0_i32_0 : i32, i32
  }
  func.func @transform_4(%arg0: i32) -> (i32, i32) {
    %c0_i32 = arith.constant 0 : i32
    %c0_i32_0 = arith.constant 0 : i32
    %c0_i32_1 = arith.constant 0 : i32
    return %c0_i32, %c0_i32_0 : i32, i32
  }
  func.func @transform_5(%arg0: i32) -> (i32, i32) {
    %c0_i32 = arith.constant 0 : i32
    %c0_i32_0 = arith.constant 0 : i32
    %c0_i32_1 = arith.constant 0 : i32
    return %c0_i32, %c0_i32_0 : i32, i32
  }
  func.func @transform_6(%arg0: i32) -> (i32, i32, i32) {
    %c0_i32 = arith.constant 0 : i32
    %c0_i32_0 = arith.constant 0 : i32
    %c0_i32_1 = arith.constant 0 : i32
    %c0_i32_2 = arith.constant 0 : i32
    return %c0_i32, %c0_i32_0, %c0_i32_1 : i32, i32, i32
  }
  func.func @transform_7(%arg0: i32) -> (i32, i32, i32) {
    %c0_i32 = arith.constant 0 : i32
    %c0_i32_0 = arith.constant 0 : i32
    %c0_i32_1 = arith.constant 0 : i32
    %c0_i32_2 = arith.constant 0 : i32
    return %c0_i32, %c0_i32_0, %c0_i32_1 : i32, i32, i32
  }
  func.func @transform_8(%arg0: i32) -> (i32, i32, i32) {
    %c0_i32 = arith.constant 0 : i32
    %c0_i32_0 = arith.constant 0 : i32
    %c0_i32_1 = arith.constant 0 : i32
    %c0_i32_2 = arith.constant 0 : i32
    return %c0_i32, %c0_i32_0, %c0_i32_1 : i32, i32, i32
  }
  func.func @transform_9(%arg0: i32) -> (i32, i32, i32) {
    %c0_i32 = arith.constant 0 : i32
    %c0_i32_0 = arith.constant 0 : i32
    %c0_i32_1 = arith.constant 0 : i32
    %c0_i32_2 = arith.constant 0 : i32
    return %c0_i32, %c0_i32_0, %c0_i32_1 : i32, i32, i32
  }
  func.func @transform_10(%arg0: i32) -> (i32, i32, i32) {
    %c0_i32 = arith.constant 0 : i32
    %c0_i32_0 = arith.constant 0 : i32
    %c0_i32_1 = arith.constant 0 : i32
    %c0_i32_2 = arith.constant 0 : i32
    return %c0_i32, %c0_i32_0, %c0_i32_1 : i32, i32, i32
  }
  func.func @transform_11(%arg0: i32) -> (i32, i32, i32) {
    %c0_i32 = arith.constant 0 : i32
    %c0_i32_0 = arith.constant 0 : i32
    %c0_i32_1 = arith.constant 0 : i32
    %c0_i32_2 = arith.constant 0 : i32
    return %c0_i32, %c0_i32_0, %c0_i32_1 : i32, i32, i32
  }
  func.func @transform_12(%arg0: i32) -> (i32, i32) {
    %c0_i32 = arith.constant 0 : i32
    %c0_i32_0 = arith.constant 0 : i32
    %c0_i32_1 = arith.constant 0 : i32
    return %c0_i32, %c0_i32_0 : i32, i32
  }
  func.func @transform_13(%arg0: i32) -> (i32, i32) {
    %c0_i32 = arith.constant 0 : i32
    %c0_i32_0 = arith.constant 0 : i32
    %c0_i32_1 = arith.constant 0 : i32
    return %c0_i32, %c0_i32_0 : i32, i32
  }
  func.func @transform_14(%arg0: i32) -> (i32, i32) {
    %c0_i32 = arith.constant 0 : i32
    %c0_i32_0 = arith.constant 0 : i32
    %c0_i32_1 = arith.constant 0 : i32
    return %c0_i32, %c0_i32_0 : i32, i32
  }
  func.func @transform_15(%arg0: i32) -> (i32, i32) {
    %c0_i32 = arith.constant 0 : i32
    %c0_i32_0 = arith.constant 0 : i32
    %c0_i32_1 = arith.constant 0 : i32
    return %c0_i32, %c0_i32_0 : i32, i32
  }
  func.func @transform_16(%arg0: i32) -> (i32, i32) {
    %c0_i32 = arith.constant 0 : i32
    %c0_i32_0 = arith.constant 0 : i32
    %c0_i32_1 = arith.constant 0 : i32
    return %c0_i32, %c0_i32_0 : i32, i32
  }
  func.func @transform_17(%arg0: i32) -> (i32, i32) {
    %c0_i32 = arith.constant 0 : i32
    %c0_i32_0 = arith.constant 0 : i32
    return %arg0, %c0_i32 : i32, i32
  }
}

</mosaic_0001>

<bundles_post_ra>
// kernel: tpu_custom_call.1
= control target key start
LH: loop header
LB: loop body
LE: loop exit
PB: predicated region body
PF: predicated region fallthrough
CT: control target
= control target key end

     0   :  { %s2493_s0 = inlined_call_operand.vmem [shape: f32[16,32], index: 0, kind: input, shape index: {}]   ;;  %s2494_s1 = inlined_call_operand.vmem [shape: f32[32,32], index: 1, kind: input, shape index: {}]   ;;  %s2495_s2 = inlined_call_operand.vmem [shape: f32[1,32], index: 2, kind: input, shape index: {}]   ;;  %s2496_s3 = inlined_call_operand.vmem [shape: f32[1,32], index: 3, kind: input, shape index: {}]   ;;  %s2497_s4 = inlined_call_operand.vmem [shape: f32[1,32], index: 4, kind: input, shape index: {}]   ;;  %s2498_s5 = inlined_call_operand.vmem [shape: f32[1,32], index: 5, kind: input, shape index: {}]   ;;  %s2499_s6 = inlined_call_operand.vmem [shape: bf16[4,32,8], index: 6, kind: input, shape index: {}]   ;;  %s2500_s7 = inlined_call_operand.vmem [shape: f32[4,1,8], index: 7, kind: input, shape index: {}]   ;;  %s2501_s8 = inlined_call_operand.vmem [shape: bf16[8,32,8], index: 8, kind: input, shape index: {}]   ;;  %s2502_s9 = inlined_call_operand.vmem [shape: f32[4,1,8], index: 9, kind: input, shape index: {}]   ;;  %s2503_s10 = inlined_call_operand.vmem [shape: f32[4,1,8], index: 10, kind: input, shape index: {}]   ;;  %s2504_s11 = inlined_call_operand.vmem [shape: bf16[4,8,32], index: 11, kind: input, shape index: {}]   ;;  %s2505_s12 = inlined_call_operand.vmem [shape: f32[1,32], index: 12, kind: input, shape index: {}]   ;;  %s2506_s13 = inlined_call_operand.vmem [shape: bf16[32,128], index: 13, kind: input, shape index: {}]   ;;  %s2507_s14 = inlined_call_operand.vmem [shape: f32[1,128], index: 14, kind: input, shape index: {}]   ;;  %s2508_s15 = inlined_call_operand.vmem [shape: bf16[128,32], index: 15, kind: input, shape index: {}]   ;;  %s2509_s16 = inlined_call_operand.vmem [shape: f32[1,32], index: 16, kind: input, shape index: {}]   ;;  %s2510_s17 = inlined_call_operand.hbm [shape: f32[16,32], index: 17, kind: output, shape index: {}]  }
   0x1   :  { %2517 = sst [smem:[#allocation11_spill]] %s2493_s0 }
   0x2   :  { %2518 = sst [smem:[#allocation12_spill]] %s2494_s1 }
   0x3   :  { %2519 = sst [smem:[#allocation13_spill]] %s2495_s2 }
   0x4   :  { %22 = vsyncpa [#allocation3], 0 }
   0x5   :  { %24 = vsyncpa [#allocation3 + $0x1], 0  ;;  %s2142_s24 = smov 0   ;;  %s2144_s25 = smov 0  }
   0x6   :  { %s2146_s26 = smov 0   ;;  %s2148_s27 = smov 0  }
   0x7 LB: > { %2520 = sst [smem:[#allocation5_spill]] %s2037_s24  ;;  %s2163_s28 = sadd.s32 4294967295, %s2049_s27   ;;  %s2049_s27 = sphi %s2148_s27, %s2534_s27   ;;  %s2045_s26 = sphi %s2146_s26, %s2536_s26   ;;  %s2041_s25 = sphi %s2144_s25, %s2538_s25   ;;  %s2037_s24 = sphi %s2142_s24, %s2537_s24  }
   0x8   : > { %2521 = sst [smem:[#allocation6_spill]] %s2045_s26  ;;  %s1693_s29 = sadd.s32 4294967294, %s2049_s27  }
   0x9   : > { %2522 = sst [smem:[#allocation7_spill]] %s2049_s27  ;;  %s2167_s0 = sadd.s32 1, %s2049_s27  }
   0xa   : > { %2523 = sst [smem:[#allocation8_spill]] %s2167_s0  ;;  %s404_s30 = sadd.s32 1, %s2045_s26 }
   0xb   : > { %s401_s18 = ssub.s32 %s2049_s27, %s2167_s0  ;;  %p414_p0 = scmp.ne.s32.totalorder %s2045_s26, %s2041_s25 }
   0xc   : > { %p402_p1 = scmp.eq.s32.totalorder %s401_s18, 0  ;;  %p415_p2 = scmp.eq.s32.totalorder %s2163_s28, 1 }
   0xd   : > { %p420_p3 = scmp.ne.s32.totalorder %s2041_s25, %s2037_s24  ;;  %p421_p4 = scmp.eq.s32.totalorder %s1693_s29, 1 }
   0xe   : > { %s2178_s19 = scalar_select %p402_p1, %s2045_s26, %s404_s30  }
   0xf   : > { %p2180_p5 = por %p415_p2, %p414_p0  ;;  %p2184_p6 = por %p421_p4, %p420_p3 }
  0x10   : > { %2524 = sst [smem:[#allocation9_spill]] %s2178_s19  ;;  %p1696_p7 = scmp.ge.s32.totalorder %s2049_s27, 1 }
  0x11   : > { %s2526_s20 = scalar_select %p2184_p6, 1, 0 }
  0x12   : > { %p500_p8 = scmp.lt.s32.totalorder %s2049_s27, 3 }
  0x13   : > { %2527 = sst [smem:[#allocation10_spill]] %s2526_s20 }
  0x14   : > { %p501_p9 = pnand %p1696_p7, %p500_p8 }
  0x15   : > { %p556_p10 = scmp.lt.s32.totalorder (!%p501_p9), %s2163_s28, 1  ;;  %s1699_s21 = sshll.u32 (!%p501_p9), %s2163_s28, 1 }
  0x16   : > { %504 = sbr.rel (%p501_p9) target bundleno = 1698 (0x6a2), region = 88  ;;  %p561_p11 = scmp.lt.s32.totalorder (!%p501_p9), %s1699_s21, 3 }
  0x17   : > { %s2528_s18 = sld [smem:[#allocation11_spill]] (!%p501_p9)  ;;  %s1863_s30 = sshll.u32 (!%p501_p9), %s2163_s28, 3 }
  0x18   : > { %s2529_s24 = sld [smem:[#allocation12_spill]] (!%p501_p9)  ;;  %s1617_s0 = scalar_lea.hbm (!%p501_p9), %s2510_s17, %s1863_s30 }
  0x19   : > { %s2530_s2 = sld [smem:[#allocation13_spill]] (!%p501_p9) }
  0x1b   : > { %s557_s22 = scalar_select %p556_p10, %s2163_s28, 1  ;;  %vm570_vm0 = vcmask 261120   ;;  %v2051_v6 = vmov 32.0   ;;  %v1875_v30 = vld [vmem:[%s2501_s8 + $0x8] sm:$0xff]  ;;  %v1877_v31 = vld [vmem:[%s2501_s8 + $0x18] sm:$0xff]  ;;  %v1874_v37 = vld [vmem:[%s2501_s8] sm:$0xff] }
  0x1c   : > { %s2540_s21 = smov (!%p561_p11, %s1699_s21), 3  ;;  %1961 = vrcp.f32 %v2051_v6  ;;  %v1881_v32 = vld [vmem:[%s2501_s8 + $0x38] sm:$0xff]  ;;  %743 = vmatpush.bf16.msra.mxu0 %v1875_v30  ;;  %769 = vmatpush.bf16.msra.mxu2 %v1877_v31  ;;  %v1876_v38 = vld [vmem:[%s2501_s8 + $0x10] sm:$0xff]  ;;  %v1879_v46 = vld [vmem:[%s2501_s8 + $0x28] sm:$0xff]  ;;  %vm1129_vm11 = vcmask 64512   ;;  %vm1221_vm12 = vcmask 130048  }
  0x1d   : > { %s1698_s23 = sshll.u32 %s557_s22, 3  ;;  %s1700_s26 = sshll.u32 %s2540_s21, 3  ;;  %v1885_v35 = vld [vmem:[%s2501_s8 + $0x58] sm:$0xff]  ;;  %821 = vmatpush.bf16.msra.mxu3 %v1881_v32  ;;  %v1880_v39 = vld [vmem:[%s2501_s8 + $0x30] sm:$0xff]  ;;  %v1883_v48 = vld [vmem:[%s2501_s8 + $0x48] sm:$0xff]  ;;  %vm1365_vm13 = vcmask 1043456  }
  0x1e   : > { %s559_s19 = scalar_lea.vmem %s2528_s18, %s1698_s23  ;;  %s564_s27 = scalar_lea.vmem %s2529_s24, %s1700_s26  ;;  %873 = vmatpush.bf16.msra.mxu1 %v1885_v35  ;;  %v1884_v40 = vld [vmem:[%s2501_s8 + $0x50] sm:$0xff]  ;;  %v1878_v49 = vld [vmem:[%s2501_s8 + $0x20] sm:$0xff]  ;;  %v1889_v50 = vld [vmem:[%s2501_s8 + $0x78] sm:$0xff] }
  0x1f   : > { %v2196_v0 = vld [vmem:[%s559_s19] sm:$0xff]  ;;  %v569_v4 = vld [vmem:[%s564_s27 + $0x8] sm:$0xff]  ;;  %v1869_v51 = vld [vmem:[%s2499_s6 + $0x18] sm:$0xff]  ;;  %s553_s23 = sand.u32 1, %s2041_s25   ;;  %s1621_s21 = sshll.u32 %s1617_s0, 4  ;;  %s1622_s21 = int_to_ptr.hbm [resolvable:$true] %s1621_s21 }
  0x20   : > { %v571_v1 = vsel %vm570_vm0, %v2196_v0, 0.0  ;;  %v568_v2 = vld [vmem:[%s564_s27] sm:$0xff]  ;;  %v613_v5 = vsel %vm570_vm0, %v569_v4, 0.0  ;;  %744 = vmatpush.bf16.msra.mxu0 %v1874_v37  ;;  %770 = vmatpush.bf16.msra.mxu2 %v1876_v38  ;;  %v1888_v54 = vld [vmem:[%s2501_s8 + $0x70] sm:$0xff]  ;;  %s1697_s29 = sshll.u32 %s553_s23, 3  ;;  %s1607_s28 = scalar_lea.sflag [#allocation3], %s553_s23 }
  0x21   : > { %572 = vadd.xlane.f32.xlu2 %v571_v1  ;;  %v610_v3 = vsel %vm570_vm0, %v568_v2, 0.0  ;;  %822 = vmatpush.bf16.msra.mxu3 %v1880_v39  ;;  %v1882_v53 = vld [vmem:[%s2501_s8 + $0x40] sm:$0xff]  ;;  %v1868_v55 = vld [vmem:[%s2499_s6 + $0x10] sm:$0xff]  ;;  %s555_s19 = scalar_lea.vmem [#allocation2], %s1697_s29  ;;  %s2001_s22 = sshra.s32 %s1622_s21, 4  ;;  %s2002_s22 = int_to_ptr.hbm [resolvable:$true] %s2001_s22 }
  0x22   : > { %611 = vadd.xlane.f32.xlu0 %v610_v3  ;;  %v1962_v7 = vpop.eup %1961  ;;  %874 = vmatpush.bf16.msra.mxu1 %v1884_v40  ;;  %v1866_v30 = vld [vmem:[%s2499_s6] sm:$0xff]  ;;  %s1619_s20 = sshll.u32 %s555_s19, 4  ;;  %s2003_s18 = scalar_lea.hbm %s2002_s22, 8  ;;  %s1620_s20 = int_to_ptr.vmem [resolvable:$true] %s1619_s20 }
  0x23   : > { %v575_v8 = vmul.f32 32.0, %v1962_v7  ;;  %vm579_vm1 = vweird.f32 %v1962_v7  ;;  %v1942_v32 = vld [vmem:[%s2530_s2] ss:$0 sm:$0xff]  ;;  %p2004_p12 = scmp.ne.s32.totalorder %s2002_s22, %s2003_s18  ;;  %s2007_s29 = scalar_lea.hbm %s2510_s17, 16 }
  0x24   : > { %795 = vmatpush.bf16.msrb.mxu2 %v1879_v46  ;;  %847 = vmatpush.bf16.msrb.mxu0 %v1883_v48  ;;  %v1943_v35 = vld [vmem:[%s2496_s3] ss:$0 sm:$0xff]  ;;  %v1947_v46 = vld [vmem:[%s2502_s9 + $0x3] ss:$0 sm:$0xff]  ;;  %p2008_p1 = scmp.lt.s32.totalorder %s2002_s22, %s2510_s17  ;;  %p2009_p2 = scmp.lt.s32.totalorder %s2007_s29, %s2003_s18 }
  0x25   : > { %v576_v9 = vsub.f32 1.0, %v575_v8  ;;  %925 = vmatpush.bf16.msrb.mxu3 %v1889_v50  ;;  %v1870_v38 = vld [vmem:[%s2499_s6 + $0x20] sm:$0xff]  ;;  %p2005_p13 = pnand %p2004_p12, %p2180_p5 }
  0x26   : > { %1027 = vmatpush.bf16.msrb.mxu1 %v1869_v51  ;;  %v1944_v40 = vld [vmem:[%s2502_s9] ss:$0 sm:$0xff]  ;;  %p2010_p3 = por %p2009_p2, %p2008_p1 }
  0x27   : > { %v577_v10 = vmul.f32 %v1962_v7, %v576_v9  ;;  %p2006_p0 = pneg %p2005_p13 }
  0x28   : > { %796 = vmatpush.bf16.msrb.mxu2 %v1878_v49  ;;  %848 = vmatpush.bf16.msrb.mxu0 %v1882_v53  ;;  %v1945_v49 = vld [vmem:[%s2503_s10 + $0x1] ss:$0 sm:$0xff] }
  0x29   : > { %v578_v11 = vadd.f32 %v1962_v7, %v577_v10  ;;  %926 = vmatpush.bf16.msrb.mxu3 %v1888_v54  ;;  %p2011_p4 = pnand %p2010_p3, %p2006_p0 }
  0x2a   : > { %614 = vadd.xlane.f32.xlu0 %v613_v5  ;;  %1028 = vmatpush.bf16.msrb.mxu1 %v1868_v55 }
  0x2b   : > { %v2205_v12 = vsel %vm579_vm1, %v1962_v7, %v578_v11  ;;  %v1941_v7 = vld [vmem:[%s2498_s5] ss:$0 sm:$0xff] }
  0x94   : > { %v573_v13 = vpop.xlane.xlu2 %572 }
  0x95   : > { %v581_v14 = vmul.f32 %v2205_v12, %v573_v13  ;;  %v612_v15 = vpop.xlane.xlu0 %611 }
  0x96   : > { %v616_v16 = vmul.f32 %v612_v15, %v2205_v12 }
  0x97   : > { %v2210_v17 = vsub.f32 %v2196_v0, %v581_v14 }
  0x98   : > { %v2212_v18 = vsub.f32 %v568_v2, %v616_v16  ;;  %v1940_v2 = vld [vmem:[%s2497_s4] ss:$0 sm:$0xff] }
  0x99   : > { %v583_v19 = vmul.f32 %v2210_v17, %v2210_v17 }
  0x9a   : > { %v620_v20 = vmul.f32 %v2212_v18, %v2212_v18 }
  0x9b   : > { %v584_v21 = vsel %vm570_vm0, %v583_v19, 0.0 }
  0x9c   : > { %585 = vadd.xlane.f32.xlu2 %v584_v21  ;;  %v622_v22 = vsel %vm570_vm0, %v620_v20, 0.0 }
  0x9d   : > { %623 = vadd.xlane.f32.xlu1 %v622_v22  ;;  %v615_v23 = vpop.xlane.xlu0 %614 }
  0x9e   : > { %v617_v24 = vmul.f32 %v615_v23, %v2205_v12 }
  0xa0   : > { %v2221_v25 = vsub.f32 %v569_v4, %v617_v24 }
  0xa2   : > { %v621_v26 = vmul.f32 %v2221_v25, %v2221_v25 }
  0xa4   : > { %v625_v27 = vsel %vm570_vm0, %v621_v26, 0.0  ;;  %v1887_v26 = vld [vmem:[%s2501_s8 + $0x68] sm:$0xff] }
  0xa5   : > { %626 = vadd.xlane.f32.xlu1 %v625_v27  ;;  %v1873_v27 = vld [vmem:[%s2499_s6 + $0x38] sm:$0xff] }
 0x10f   : > { %v586_v33 = vpop.xlane.xlu2 %585 }
 0x110   : > { %v624_v28 = vpop.xlane.xlu1 %623  ;;  %v587_v36 = vmul.f32 %v586_v33, %v2205_v12  ;;  %v1872_v33 = vld [vmem:[%s2499_s6 + $0x30] sm:$0xff] }
 0x111   : > { %v628_v29 = vmul.f32 %v624_v28, %v2205_v12 }
 0x112   : > { %v588_v43 = vadd.f32 1e-05, %v587_v36 }
 0x113   : > { %v630_v34 = vadd.f32 1e-05, %v628_v29  ;;  %v1886_v29 = vld [vmem:[%s2501_s8 + $0x60] sm:$0xff] }
 0x114   : > { %vm595_vm8 = vweird.f32 %v588_v43 }
 0x115   : > { %1963 = vrsqrt.f32 %v630_v34  ;;  %vm638_vm3 = vweird.f32 %v630_v34 }
 0x118   : > { %v627_v41 = vpop.xlane.xlu1 %626 }
 0x119   : > { %v629_v42 = vmul.f32 %v627_v41, %v2205_v12 }
 0x11b   : > { %v1964_v44 = vpop.eup %1963  ;;  %v631_v45 = vadd.f32 1e-05, %v629_v42 }
 0x11c   : > { %v633_v47 = vmul.f32 %v1964_v44, %v630_v34  ;;  %vm639_vm2 = vweird.f32 %v1964_v44 }
 0x11d   : > { %1965 = vrsqrt.f32 %v631_v45  ;;  %vm640_vm4 = vmor %vm638_vm3, %vm639_vm2  ;;  %vm648_vm6 = vweird.f32 %v631_v45 }
 0x11e   : > { %1967 = vrsqrt.f32 %v588_v43  ;;  %v634_v52 = vmul.f32 %v1964_v44, %v633_v47 }
 0x120   : > { %v635_v56 = vmul.f32 0.5, %v634_v52 }
 0x122   : > { %v636_v57 = vsub.f32 1.5, %v635_v56 }
 0x123   : > { %v1966_v58 = vpop.eup %1965 }
 0x124   : > { %v1968_v59 = vpop.eup %1967  ;;  %v637_v60 = vmul.f32 %v1964_v44, %v636_v57  ;;  %v643_v61 = vmul.f32 %v1966_v58, %v631_v45  ;;  %vm649_vm5 = vweird.f32 %v1966_v58 }
 0x125   : > { %v590_v1 = vmul.f32 %v1968_v59, %v588_v43  ;;  %vm650_vm7 = vmor %vm648_vm6, %vm649_vm5  ;;  %vm596_vm9 = vweird.f32 %v1968_v59 }
 0x126   : > { %v641_v62 = vsel %vm640_vm4, %v1964_v44, %v637_v60  ;;  %v644_v63 = vmul.f32 %v1966_v58, %v643_v61  ;;  %vm597_vm10 = vmor %vm595_vm8, %vm596_vm9  ;;  %v1946_v44 = vld [vmem:[%s2502_s9 + $0x1] ss:$0 sm:$0xff] }
 0x127   : > { %v652_v3 = vmul.f32 %v641_v62, %v2212_v18  ;;  %v591_v6 = vmul.f32 %v1968_v59, %v590_v1 }
 0x128   : > { %v645_v4 = vmul.f32 0.5, %v644_v63 }
 0x129   : > { %v658_v8 = vmul.f32 %v1940_v2, %v652_v3  ;;  %v592_v11 = vmul.f32 0.5, %v591_v6 }
 0x12a   : > { %v646_v5 = vsub.f32 1.5, %v645_v4 }
 0x12b   : > { %v664_v13 = vadd.f32 %v1941_v7, %v658_v8  ;;  %v593_v16 = vsub.f32 1.5, %v592_v11 }
 0x12c   : > { %v647_v9 = vmul.f32 %v1966_v58, %v646_v5 }
 0x12d   : > { %v667_v18 = vpack.c.bf16 %v664_v13, %v664_v13  ;;  %v594_v21 = vmul.f32 %v1968_v59, %v593_v16 }
 0x12e   : > { %v651_v10 = vsel %vm650_vm7, %v1966_v58, %v647_v9 }
 0x12f   : > { %v653_v14 = vmul.f32 %v651_v10, %v2221_v25  ;;  %v719_v22 = vunpack.c.l.b16 %v667_v18  ;;  %v1867_v25 = vld [vmem:[%s2499_s6 + $0x8] sm:$0xff]  ;;  %v598_v28 = vsel %vm597_vm10, %v1968_v59, %v594_v21  ;;  %v1949_v21 = vld [vmem:[%s2500_s7 + $0x1] ss:$0 sm:$0xff] }
 0x130   : > { %v599_v31 = vmul.f32 %v598_v28, %v2210_v17  ;;  %v1871_v17 = vld [vmem:[%s2499_s6 + $0x28] sm:$0xff]  ;;  %v1951_v28 = vld [vmem:[%s2503_s10 + $0x3] ss:$0 sm:$0xff] }
 0x131   : > { %v659_v15 = vmul.f32 %v1940_v2, %v653_v14 }
 0x132   : > { %v604_v34 = vmul.f32 %v1942_v32, %v599_v31 }
 0x133   : > { %v665_v19 = vadd.f32 %v1941_v7, %v659_v15  ;;  %v1948_v7 = vld [vmem:[%s2503_s10] ss:$0 sm:$0xff] }
 0x134   : > { %v609_v36 = vadd.f32 %v1943_v35, %v604_v34 }
 0x135   : > { %v668_v20 = vpack.c.bf16 %v665_v19, %v665_v19 }
 0x136   : > { %v666_v37 = vpack.c.bf16 %v609_v36, %v609_v36 }
 0x137   : > { %v720_v23 = vunpack.c.l.b16 %v668_v20 }
 0x139   : > { %v721_v24 = vpack.c.b16 %v720_v23, %v719_v22 }
 0x13b   : > { %1709 = vmatmul.msk.bf16.vlgmr.msra.gmra.mxu0 %vm570_vm0, %v721_v24  ;;  %1718 = vmatmul.msk.bf16.vlgmr.msra.gmra.mxu2 %vm570_vm0, %v721_v24 }
 0x13c   : > { %1736 = vmatmul.msk.bf16.vlgmr.msra.gmra.mxu3 %vm570_vm0, %v721_v24  ;;  %1754 = vmatmul.msk.bf16.vlgmr.msra.gmra.mxu1 %vm570_vm0, %v721_v24 }
 0x13d   : > { %899 = vmatpush.bf16.msra.mxu2 %v1887_v26  ;;  %1002 = vmatpush.bf16.msra.mxu0 %v1867_v25  ;;  %v1950_v26 = vld [vmem:[%s2502_s9 + $0x2] ss:$0 sm:$0xff] }
 0x13e   : > { %1077 = vmatpush.bf16.msra.mxu3 %v1873_v27 }
 0x141   : > { %900 = vmatpush.bf16.msra.mxu2 %v1886_v29  ;;  %1003 = vmatpush.bf16.msra.mxu0 %v1866_v30 }
 0x142   : > { %1078 = vmatpush.bf16.msra.mxu3 %v1872_v33 }
 0x14b   : > { %1727 = vmatmul.msk.bf16.vlgmr.msrb.gmra.mxu2 %vm570_vm0, %v721_v24  ;;  %1745 = vmatmul.msk.bf16.vlgmr.msrb.gmra.mxu0 %vm570_vm0, %v721_v24 }
 0x14c   : > { %1772 = vmatmul.msk.bf16.vlgmr.msrb.gmra.mxu3 %vm570_vm0, %v721_v24  ;;  %1790 = vmatmul.msk.bf16.vlgmr.msrb.gmra.mxu1 %vm570_vm0, %v666_v37 }
 0x14d   : > { %1052 = vmatpush.bf16.msrb.mxu2 %v1871_v17 }
 0x151   : > { %1053 = vmatpush.bf16.msrb.mxu2 %v1870_v38 }
 0x15b   : > { %1763 = vmatmul.msk.bf16.vlgmr.msra.gmra.mxu2 %vm570_vm0, %v721_v24  ;;  %1781 = vmatmul.msk.bf16.vlgmr.msra.gmra.mxu0 %vm570_vm0, %v666_v37 }
 0x15c   : > { %1808 = vmatmul.msk.bf16.vlgmr.msra.gmra.mxu3 %vm570_vm0, %v666_v37 }
 0x16b   : > { %1799 = vmatmul.msk.bf16.vlgmr.msrb.gmra.mxu2 %vm570_vm0, %v666_v37 }
 0x1b8   : > { %v746_v39 = vpop.f32.mrf.mxu0 }
 0x1b9   : > { %v876_v41 = vpop.f32.mrf.mxu1  ;;  %v1100_v42 = vadd.f32 %v1944_v40, %v746_v39 }
 0x1ba   : > { %v951_v57 = vadd.f32 %v1945_v49, %v876_v41 }
 0x1bb   : > { %v1108_v48 = vpack.c.bf16 %v1100_v42, %v1100_v42 }
 0x1bc   : > { %v1118_v5 = vpack.c.bf16 %v951_v57, %v951_v57  ;;  %v1954_v57 = vld [vmem:[%s2500_s7 + $0x3] ss:$0 sm:$0xff] }
 0x1bd   : > { %v1126_v56 = vunpack.c.l.b16 %v1108_v48 }
 0x1be   : > { %v772_v43 = vpop.f32.mrf.mxu2  ;;  %v1294_v18 = vunpack.c.l.b16 %v1118_v5 }
 0x1bf   : > { %v824_v45 = vpop.f32.mrf.mxu3  ;;  %v1102_v52 = vadd.f32 %v1946_v44, %v772_v43 }
 0x1c0   : > { %v748_v47 = vpop.f32.mrf.mxu0  ;;  %v1106_v55 = vadd.f32 %v1947_v46, %v824_v45 }
 0x1c1   : > { %v1101_v50 = vadd.f32 %v1944_v40, %v748_v47  ;;  %v878_v51 = vpop.f32.mrf.mxu1  ;;  %v1110_v60 = vpack.c.bf16 %v1102_v52, %v1102_v52  ;;  %v1952_v40 = vld [vmem:[%s2500_s7] ss:$0 sm:$0xff] }
 0x1c2   : > { %v952_v54 = vadd.f32 %v1945_v49, %v878_v51  ;;  %v1114_v2 = vpack.c.bf16 %v1106_v55, %v1106_v55 }
 0x1c3   : > { %v1109_v53 = vpack.c.bf16 %v1101_v50, %v1101_v50  ;;  %v1151_v11 = vunpack.c.l.b16 %v1110_v60 }
 0x1c4   : > { %v1119_v62 = vpack.c.bf16 %v952_v54, %v952_v54  ;;  %v1199_v15 = vunpack.c.l.b16 %v1114_v2 }
 0x1c5   : > { %v1127_v58 = vunpack.c.l.b16 %v1109_v53 }
 0x1c6   : > { %v774_v59 = vpop.f32.mrf.mxu2  ;;  %v1295_v13 = vunpack.c.l.b16 %v1119_v62 }
 0x1c7   : > { %v1128_v61 = vpack.c.b16 %v1127_v58, %v1126_v56  ;;  %v1103_v63 = vadd.f32 %v1946_v44, %v774_v59  ;;  %v826_v1 = vpop.f32.mrf.mxu3 }
 0x1c8   : > { %v1107_v3 = vadd.f32 %v1947_v46, %v826_v1  ;;  %v850_v4 = vpop.f32.mrf.mxu0  ;;  %v1296_v24 = vpack.c.b16 %v1295_v13, %v1294_v18  ;;  %v1955_v13 = vld [vmem:[%s2500_s7 + $0x2] ss:$0 sm:$0xff] }
 0x1c9   : > { %v1111_v6 = vpack.c.bf16 %v1103_v63, %v1103_v63  ;;  %v1030_v8 = vpop.f32.mrf.mxu1  ;;  %v1134_v9 = vsel %vm1129_vm11, %v1128_v61, 0  ;;  %v949_v20 = vadd.f32 %v1948_v7, %v850_v4  ;;  %v1953_v61 = vld [vmem:[%s2503_s10 + $0x2] ss:$0 sm:$0xff] }
 0x1ca   : > { %v1115_v10 = vpack.c.bf16 %v1107_v3, %v1107_v3  ;;  %1143 = vmatpush.bf16.xpose.msrb.mxu0 %v1134_v9  ;;  %v1031_v32 = vadd.f32 %v1949_v21, %v1030_v8 }
 0x1cb   : > { %v1152_v14 = vunpack.c.l.b16 %v1111_v6  ;;  %v1116_v31 = vpack.c.bf16 %v949_v20, %v949_v20 }
 0x1cc   : > { %v1200_v16 = vunpack.c.l.b16 %v1115_v10  ;;  %v1085_v38 = vpack.c.bf16 %v1031_v32, %v1031_v32 }
 0x1cd   : > { %v1153_v19 = vpack.c.b16 %v1152_v14, %v1151_v11  ;;  %v1272_v37 = vunpack.c.l.b16 %v1116_v31 }
 0x1ce   : > { %v1201_v22 = vpack.c.b16 %v1200_v16, %v1199_v15  ;;  %v798_v23 = vpop.f32.mrf.mxu2 }
 0x1cf   : > { %v928_v25 = vpop.f32.mrf.mxu3  ;;  %v1158_v27 = vsel %vm1129_vm11, %v1153_v19, 0  ;;  %v1104_v35 = vadd.f32 %v1950_v26, %v798_v23 }
 0x1d0   : > { %v852_v29 = vpop.f32.mrf.mxu0  ;;  %1167 = vmatpush.bf16.xpose.msra.mxu1 %v1158_v27  ;;  %v1206_v30 = vsel %vm1129_vm11, %v1201_v22, 0  ;;  %v955_v17 = vadd.f32 %v1951_v28, %v928_v25 }
 0x1d1   : > { %v950_v33 = vadd.f32 %v1948_v7, %v852_v29  ;;  %v1032_v34 = vpop.f32.mrf.mxu1  ;;  %1215 = vmatpush.bf16.xpose.msrb.mxu3 %v1206_v30  ;;  %v1112_v42 = vpack.c.bf16 %v1104_v35, %v1104_v35 }
 0x1d2   : > { %v1122_v46 = vpack.c.bf16 %v955_v17, %v955_v17 }
 0x1d3   : > { %v1117_v36 = vpack.c.bf16 %v950_v33, %v950_v33  ;;  %v1175_v52 = vunpack.c.l.b16 %v1112_v42 }
 0x1d4   : > { %v1338_v55 = vunpack.c.l.b16 %v1122_v46 }
 0x1d5   : > { %v1273_v39 = vunpack.c.l.b16 %v1117_v36 }
 0x1d6   : > { %v800_v41 = vpop.f32.mrf.mxu2 }
 0x1d7   : > { %v1274_v43 = vpack.c.b16 %v1273_v39, %v1272_v37  ;;  %v1105_v44 = vadd.f32 %v1950_v26, %v800_v41  ;;  %v930_v45 = vpop.f32.mrf.mxu3  ;;  %1810 = vmatmul.msk.bf16.vlgmr.msra.gmra.mxu1 %vm1129_vm11, %v1085_v38 }
 0x1d8   : > { %1308 = vmatpush.bf16.msrb.mxu1 %v1296_v24  ;;  %v956_v47 = vadd.f32 %v1951_v28, %v930_v45  ;;  %v1005_v48 = vpop.f32.mrf.mxu0 }
 0x1d9   : > { %v1113_v49 = vpack.c.bf16 %v1105_v44, %v1105_v44  ;;  %v1006_v50 = vadd.f32 %v1952_v40, %v1005_v48  ;;  %1286 = vmatpush.bf16.msra.mxu0 %v1274_v43 }
 0x1da   : > { %v1123_v51 = vpack.c.bf16 %v956_v47, %v956_v47 }
 0x1db   : > { %v1176_v53 = vunpack.c.l.b16 %v1113_v49  ;;  %v1084_v54 = vpack.c.bf16 %v1006_v50, %v1006_v50 }
 0x1dc   : > { %v1339_v56 = vunpack.c.l.b16 %v1123_v51 }
 0x1dd   : > { %v1177_v58 = vpack.c.b16 %v1176_v53, %v1175_v52  ;;  %1809 = vmatmul.msk.bf16.vlgmr.msrb.gmra.mxu0 %vm1129_vm11, %v1084_v54 }
 0x1de   : > { %v1340_v59 = vpack.c.b16 %v1339_v56, %v1338_v55  ;;  %v902_v60 = vpop.f32.mrf.mxu2 }
 0x1df   : > { %v1080_v62 = vpop.f32.mrf.mxu3  ;;  %v1182_v63 = vsel %vm1129_vm11, %v1177_v58, 0  ;;  %v953_v4 = vadd.f32 %v1953_v61, %v902_v60 }
 0x1e0   : > { %v1081_v1 = vadd.f32 %v1954_v57, %v1080_v62  ;;  %1352 = vmatpush.bf16.msra.mxu3 %v1340_v59  ;;  %v1007_v2 = vpop.f32.mrf.mxu0  ;;  %1191 = vmatpush.bf16.xpose.msra.mxu2 %v1182_v63 }
 0x1e1   : > { %v1120_v6 = vpack.c.bf16 %v953_v4, %v953_v4  ;;  %v965_v4 = vld [vmem:[%s2504_s11] sm:$0xf] }
 0x1e2   : > { %v1087_v3 = vpack.c.bf16 %v1081_v1, %v1081_v1 }
 0x1e3   : > { %v1316_v10 = vunpack.c.l.b16 %v1120_v6  ;;  %v968_v6 = vld [vmem:[%s2504_s11 + $0xc] sm:$0xf] }
 0x1e4   : > { %1812 = vmatmul.msk.bf16.vlgmr.msrb.gmra.mxu3 %vm1129_vm11, %v1087_v3 }
 0x1e6   : > { %v904_v5 = vpop.f32.mrf.mxu2 }
 0x1e7   : > { %v954_v7 = vadd.f32 %v1953_v61, %v904_v5  ;;  %v1082_v8 = vpop.f32.mrf.mxu3  ;;  %v1367_v5 = vsel %vm1365_vm13, %v965_v4, 0  ;;  %v1958_v4 = vld [vmem:[%s2498_s5] ss:$0 sm:$0xff] }
 0x1e8   : > { %1376 = vmatpush.bf16.msrb.mxu0 %v1367_v5  ;;  %v967_v8 = vld [vmem:[%s2504_s11 + $0x8] sm:$0xf] }
 0x1e9   : > { %v1121_v9 = vpack.c.bf16 %v954_v7, %v954_v7  ;;  %v1424_v7 = vsel %vm1365_vm13, %v968_v6, 0 }
 0x1ea   : > { %1433 = vmatpush.bf16.msrb.mxu3 %v1424_v7 }
 0x1eb   : > { %v1317_v11 = vunpack.c.l.b16 %v1121_v9  ;;  %v1405_v9 = vsel %vm1365_vm13, %v967_v8, 0  ;;  %v1893_v8 = vld [vmem:[%s2508_s15 + $0x8] sm:$0xff] }
 0x1ed   : > { %v1318_v14 = vpack.c.b16 %v1317_v11, %v1316_v10  ;;  %v966_v10 = vld [vmem:[%s2504_s11 + $0x4] sm:$0xf] }
 0x1ee   : > { %v1055_v15 = vpop.f32.mrf.mxu2  ;;  %v1386_v11 = vsel %vm1365_vm13, %v966_v10, 0  ;;  %v1959_v10 = vld [vmem:[%s2507_s14] ss:$0 sm:$0xff] }
 0x1ef   : > { %v1056_v16 = vadd.f32 %v1955_v13, %v1055_v15  ;;  %1330 = vmatpush.bf16.msrb.mxu2 %v1318_v14  ;;  %1395 = vmatpush.bf16.msra.mxu1 %v1386_v11 }
 0x1f1   : > { %v1086_v18 = vpack.c.bf16 %v1056_v16, %v1056_v16 }
 0x1f3   : > { %1811 = vmatmul.msk.bf16.vlgmr.msra.gmra.mxu2 %vm1129_vm11, %v1086_v18 }
 0x1f4   : > { %1414 = vmatpush.bf16.msra.mxu2 %v1405_v9  ;;  %v1892_v9 = vld [vmem:[%s2508_s15] sm:$0xff] }
 0x1f6   : > { %v1057_v19 = vpop.f32.mrf.mxu2 }
 0x254   : > { %v1169_v20 = vpop.f32.mrf.mxu1 }
 0x255   : > { %v1225_v31 = vsel %vm1221_vm12, %v1169_v20, -inf }
 0x25a   : > { %v1145_v21 = vpop.f32.mrf.mxu0 }
 0x25b   : > { %v1222_v22 = vsel %vm1221_vm12, %v1145_v21, -inf }
 0x25c   : > { %v1171_v23 = vpop.f32.mrf.mxu1  ;;  %1223 = vmax.xlane.f32.xlu2 %v1222_v22 }
 0x262   : > { %v1147_v24 = vpop.f32.mrf.mxu0 }
 0x267   : > { %v1217_v26 = vpop.f32.mrf.mxu3 }
 0x268   : > { %v1231_v25 = vsel %vm1221_vm12, %v1217_v26, -inf }
 0x269   : > { %1232 = vmax.xlane.f32.xlu1 %v1231_v25 }
 0x26f   : > { %v1219_v27 = vpop.f32.mrf.mxu3 }
 0x276   : > { %v1193_v28 = vpop.f32.mrf.mxu2 }
 0x277   : > { %v1228_v29 = vsel %vm1221_vm12, %v1193_v28, -inf }
 0x278   : > { %1229 = vmax.xlane.f32.xlu0 %v1228_v29 }
 0x27e   : > { %v1195_v30 = vpop.f32.mrf.mxu2 }
 0x280   : > { %1226 = vmax.xlane.f32.xlu0 %v1225_v31 }
 0x2cf   : > { %v1224_v32 = vpop.xlane.xlu2 %1223 }
 0x2d0   : > { %v1234_v33 = vsub.f32 %v1145_v21, %v1224_v32 }
 0x2d2   : > { %v1238_v34 = vmul.f32 1.442695, %v1234_v33 }
 0x2d4   : > { %1969 = vpow2.f32 %v1238_v34 }
 0x2da   : > { %v1970_v35 = vpop.eup %1969 }
 0x2db   : > { %v1246_v36 = vsel %vm1221_vm12, %v1970_v35, 0.0 }
 0x2dc   : > { %v1233_v17 = vpop.xlane.xlu1 %1232  ;;  %1247 = vadd.xlane.f32.xlu0 %v1246_v36 }
 0x2dd   : > { %v1237_v37 = vsub.f32 %v1217_v26, %v1233_v17 }
 0x2df   : > { %v1244_v38 = vmul.f32 1.442695, %v1237_v37 }
 0x2e1   : > { %1971 = vpow2.f32 %v1244_v38 }
 0x2e7   : > { %v1972_v39 = vpop.eup %1971 }
 0x2e8   : > { %v1255_v40 = vsel %vm1221_vm12, %v1972_v39, 0.0 }
 0x2e9   : > { %1256 = vadd.xlane.f32.xlu2 %v1255_v40 }
 0x2eb   : > { %v1230_v41 = vpop.xlane.xlu0 %1229 }
 0x2ec   : > { %v1236_v42 = vsub.f32 %v1193_v28, %v1230_v41 }
 0x2ee   : > { %v1242_v43 = vmul.f32 1.442695, %v1236_v42 }
 0x2f0   : > { %1973 = vpow2.f32 %v1242_v43 }
 0x2f3   : > { %v1227_v44 = vpop.xlane.xlu0 %1226 }
 0x2f4   : > { %v1235_v45 = vsub.f32 %v1169_v20, %v1227_v44 }
 0x2f6   : > { %v1974_v46 = vpop.eup %1973  ;;  %v1240_v47 = vmul.f32 1.442695, %v1235_v45 }
 0x2f7   : > { %v1252_v48 = vsel %vm1221_vm12, %v1974_v46, 0.0 }
 0x2f8   : > { %1975 = vpow2.f32 %v1240_v47  ;;  %1253 = vadd.xlane.f32.xlu1 %v1252_v48 }
 0x2fe   : > { %v1976_v49 = vpop.eup %1975 }
 0x2ff   : > { %v1249_v50 = vsel %vm1221_vm12, %v1976_v49, 0.0 }
 0x300   : > { %1250 = vadd.xlane.f32.xlu1 %v1249_v50  ;;  %v1899_v50 = vld [vmem:[%s2508_s15 + $0x38] sm:$0xff] }
 0x34f   : > { %v1248_v51 = vpop.xlane.xlu0 %1247 }
 0x350   : > { %1977 = vrcp.f32 %v1248_v51 }
 0x356   : > { %v1978_v52 = vpop.eup %1977 }
 0x357   : > { %v1262_v53 = vmul.f32 %v1978_v52, %v1970_v35 }
 0x359   : > { %v1266_v54 = vpack.c.bf16 %v1262_v53, %v1262_v53  ;;  %v1898_v53 = vld [vmem:[%s2508_s15 + $0x30] sm:$0xff] }
 0x35b   : > { %1813 = vmatmul.msk.bf16.vlgmr.msra.gmra.mxu0 %vm1221_vm12, %v1266_v54 }
 0x35c   : > { %v1257_v55 = vpop.xlane.xlu2 %1256 }
 0x35d   : > { %1979 = vrcp.f32 %v1257_v55  ;;  %v1897_v55 = vld [vmem:[%s2508_s15 + $0x28] sm:$0xff] }
 0x363   : > { %v1980_v56 = vpop.eup %1979 }
 0x364   : > { %v1265_v57 = vmul.f32 %v1980_v56, %v1972_v39  ;;  %v1956_v39 = vld [vmem:[%s2505_s12] ss:$0 sm:$0xff] }
 0x365   : > { %v1896_v56 = vld [vmem:[%s2508_s15 + $0x20] sm:$0xff] }
 0x366   : > { %v1269_v58 = vpack.c.bf16 %v1265_v57, %v1265_v57 }
 0x368   : > { %1816 = vmatmul.msk.bf16.vlgmr.msra.gmra.mxu3 %vm1221_vm12, %v1269_v58 }
 0x36b   : > { %v1254_v59 = vpop.xlane.xlu1 %1253 }
 0x36c   : > { %1981 = vrcp.f32 %v1254_v59 }
 0x372   : > { %v1982_v60 = vpop.eup %1981 }
 0x373   : > { %v1264_v61 = vmul.f32 %v1982_v60, %v1974_v46  ;;  %v1251_v62 = vpop.xlane.xlu1 %1250 }
 0x374   : > { %1983 = vrcp.f32 %v1251_v62 }
 0x375   : > { %v1268_v63 = vpack.c.bf16 %v1264_v61, %v1264_v61  ;;  %v1894_v61 = vld [vmem:[%s2508_s15 + $0x10] sm:$0xff] }
 0x377   : > { %1815 = vmatmul.msk.bf16.vlgmr.msrb.gmra.mxu2 %vm1221_vm12, %v1268_v63 }
 0x37a   : > { %v1984_v1 = vpop.eup %1983 }
 0x37b   : > { %v1263_v2 = vmul.f32 %v1984_v1, %v1976_v49  ;;  %v1890_v49 = vld [vmem:[%s2506_s13] sm:$0xff] }
 0x37c   : > { %v1957_v1 = vld [vmem:[%s2497_s4] ss:$0 sm:$0xff] }
 0x37d   : > { %v1267_v3 = vpack.c.bf16 %v1263_v2, %v1263_v2 }
 0x37f   : > { %1814 = vmatmul.msk.bf16.vlgmr.msrb.gmra.mxu1 %vm1221_vm12, %v1267_v3 }
 0x380   : > { %1591 = vmatpush.bf16.msrb.mxu1 %v1899_v50 }
 0x384   : > { %1592 = vmatpush.bf16.msrb.mxu1 %v1898_v53 }
 0x388   : > { %1593 = vmatpush.bf16.msrb.mxu1 %v1897_v55 }
 0x38c   : > { %1594 = vmatpush.bf16.msrb.mxu1 %v1896_v56 }
 0x3d8   : > { %v1288_v13 = vpop.f32.mrf.mxu0 }
 0x3d9   : > { %v1358_v14 = vpack.c.bf16 %v1288_v13, %v1288_v13 }
 0x3db   : > { %1817 = vmatmul.msk.bf16.vlgmr.msrb.gmra.mxu0 %vm1129_vm11, %v1358_v14 }
 0x3e0   : > { %v1290_v15 = vpop.f32.mrf.mxu0 }
 0x3eb   : > { %v1354_v16 = vpop.f32.mrf.mxu3 }
 0x3ec   : > { %v1361_v18 = vpack.c.bf16 %v1354_v16, %v1354_v16 }
 0x3ee   : > { %1820 = vmatmul.msk.bf16.vlgmr.msrb.gmra.mxu3 %vm1129_vm11, %v1361_v18  ;;  %v1960_v18 = vld [vmem:[%s2509_s16] ss:$0 sm:$0xff] }
 0x3f3   : > { %v1356_v19 = vpop.f32.mrf.mxu3 }
 0x3fa   : > { %v1332_v20 = vpop.f32.mrf.mxu2 }
 0x3fb   : > { %v1360_v21 = vpack.c.bf16 %v1332_v20, %v1332_v20 }
 0x3fc   : > { %v1310_v22 = vpop.f32.mrf.mxu1 }
 0x3fd   : > { %v1359_v23 = vpack.c.bf16 %v1310_v22, %v1310_v22  ;;  %1819 = vmatmul.msk.bf16.vlgmr.msra.gmra.mxu2 %vm1129_vm11, %v1360_v21 }
 0x3ff   : > { %1818 = vmatmul.msk.bf16.vlgmr.msra.gmra.mxu1 %vm1129_vm11, %v1359_v23 }
 0x402   : > { %v1334_v24 = vpop.f32.mrf.mxu2 }
 0x404   : > { %v1312_v26 = vpop.f32.mrf.mxu1 }
 0x458   : > { %v1378_v25 = vpop.f32.mrf.mxu0 }
 0x459   : > { %v1439_v32 = vsel %vm570_vm0, %v1378_v25, 0.0 }
 0x460   : > { %v1380_v27 = vpop.f32.mrf.mxu0 }
 0x471   : > { %v1435_v28 = vpop.f32.mrf.mxu3 }
 0x472   : > { %v1444_v17 = vsel %vm570_vm0, %v1435_v28, 0.0 }
 0x479   : > { %v1437_v29 = vpop.f32.mrf.mxu3 }
 0x47c   : > { %v1397_v30 = vpop.f32.mrf.mxu1 }
 0x47d   : > { %v1440_v31 = vsel %vm570_vm0, %v1397_v30, 0.0 }
 0x47e   : > { %v1441_v33 = vadd.f32 %v1440_v31, %v1439_v32 }
 0x480   : > { %v1416_v34 = vpop.f32.mrf.mxu2 }
 0x481   : > { %v1442_v35 = vsel %vm570_vm0, %v1416_v34, 0.0 }
 0x482   : > { %v1443_v36 = vadd.f32 %v1442_v35, %v1441_v33 }
 0x484   : > { %v1445_v37 = vadd.f32 %v1444_v17, %v1443_v36  ;;  %v1399_v38 = vpop.f32.mrf.mxu1 }
 0x486   : > { %v1446_v40 = vadd.f32 %v1445_v37, %v2196_v0  ;;  %v1891_v0 = vld [vmem:[%s2506_s13 + $0x8] sm:$0xff] }
 0x487   : > { %1514 = vmatpush.bf16.msra.mxu0 %v1891_v0 }
 0x488   : > { %v1418_v41 = vpop.f32.mrf.mxu2  ;;  %v2408_v42 = vadd.f32 %v1956_v39, %v1446_v40 }
 0x48a   : > { %v1452_v43 = vsel %vm570_vm0, %v2408_v42, 0.0 }
 0x48b   : > { %1453 = vadd.xlane.f32.xlu2 %v1452_v43  ;;  %1515 = vmatpush.bf16.msra.mxu0 %v1890_v49 }
 0x4fe   : > { %v1454_v44 = vpop.xlane.xlu2 %1453 }
 0x4ff   : > { %v1455_v45 = vmul.f32 %v1454_v44, %v2205_v12 }
 0x501   : > { %v1456_v46 = vsub.f32 %v2408_v42, %v1455_v45 }
 0x503   : > { %v1457_v47 = vmul.f32 %v1456_v46, %v1456_v46 }
 0x505   : > { %v1458_v48 = vsel %vm570_vm0, %v1457_v47, 0.0 }
 0x506   : > { %1459 = vadd.xlane.f32.xlu0 %v1458_v48 }
 0x579   : > { %v1460_v51 = vpop.xlane.xlu0 %1459 }
 0x57a   : > { %v1461_v52 = vmul.f32 %v1460_v51, %v2205_v12  ;;  %v1895_v12 = vld [vmem:[%s2508_s15 + $0x18] sm:$0xff] }
 0x57b   : > { %1595 = vmatpush.bf16.msrb.mxu1 %v1895_v12 }
 0x57c   : > { %v1462_v54 = vadd.f32 1e-05, %v1461_v52 }
 0x57e   : > { %1985 = vrsqrt.f32 %v1462_v54  ;;  %vm1469_vm15 = vweird.f32 %v1462_v54 }
 0x57f   : > { %1596 = vmatpush.bf16.msrb.mxu1 %v1894_v61 }
 0x583   : > { %1597 = vmatpush.bf16.msrb.mxu1 %v1893_v8 }
 0x584   : > { %v1986_v57 = vpop.eup %1985 }
 0x585   : > { %v1464_v58 = vmul.f32 %v1986_v57, %v1462_v54  ;;  %vm1470_vm14 = vweird.f32 %v1986_v57 }
 0x586   : > { %vm1471_vm1 = vmor %vm1469_vm15, %vm1470_vm14 }
 0x587   : > { %v1465_v59 = vmul.f32 %v1986_v57, %v1464_v58  ;;  %1598 = vmatpush.bf16.msrb.mxu1 %v1892_v9 }
 0x589   : > { %v1466_v60 = vmul.f32 0.5, %v1465_v59 }
 0x58b   : > { %v1467_v62 = vsub.f32 1.5, %v1466_v60 }
 0x58d   : > { %v1468_v63 = vmul.f32 %v1986_v57, %v1467_v62 }
 0x58f   : > { %v1472_v2 = vsel %vm1471_vm1, %v1986_v57, %v1468_v63 }
 0x590   : > { %v1473_v3 = vmul.f32 %v1472_v2, %v1456_v46 }
 0x592   : > { %v1478_v5 = vmul.f32 %v1957_v1, %v1473_v3 }
 0x594   : > { %v1483_v6 = vadd.f32 %v1958_v4, %v1478_v5 }
 0x596   : > { %v1484_v7 = vpack.c.bf16 %v1483_v6, %v1483_v6 }
 0x598   : > { %1829 = vmatmul.msk.bf16.vlgmr.msra.gmra.mxu0 %vm570_vm0, %v1484_v7 }
 0x615   : > { %v1517_v11 = vpop.f32.mrf.mxu0 }
 0x616   : > { %v1518_v13 = vadd.f32 %v1959_v10, %v1517_v11 }
 0x618   : > { %v1521_v14 = vmax.f32 %v1518_v13, 0.0 }
 0x61a   : > { %v1522_v15 = vpack.c.bf16 %v1521_v14, %v1521_v14 }
 0x61c   : > { %1599 = vmatmul.bf16.vlgmr.msrb.gmra.mxu1 %v1522_v15 }
 0x61d   : > { %v1519_v16 = vpop.f32.mrf.mxu0 }
 0x699   : > { %v1600_v19 = vpop.f32.mrf.mxu1 }
 0x69a   : > { %v1601_v20 = vadd.f32 %v1960_v18, %v1600_v19 }
 0x69c   : > { %v1604_v21 = vadd.f32 %v1601_v20, %v2408_v42 }
 0x69e   : > { %1605 = vst.msk [vmem:[%s555_s19] sm:$0xff] %vm570_vm0, %v1604_v21 }
 0x69f   : > { %2014 = shalt.err (!%p2011_p4)
}
 0x6a0   : > { %1900 = dma.vmem_to_hbm [thread:$0]  (%p2180_p5), %s1620_s20, 128, %s1622_s21, %s1607_s28  }
 0x6a1   : > { %v1602_v22 = vpop.f32.mrf.mxu1 }
 0x6a2 PF: > { %s2531_s23 = sld [smem:[#allocation7_spill]] }
 0x6a3   : > { %s2532_s0 = sld [smem:[#allocation5_spill]] }
 0x6a8   : > { %p1906_p7 = scmp.ge.s32.totalorder %s2531_s23, 2 }
 0x6a9   : > { %s1633_s2 = sand.u32 1, %s2532_s0  }
 0x6aa   : > { %p1903_p8 = pnand %p1906_p7, %p2184_p6  ;;  %s1634_s30 = scalar_lea.sflag [#allocation3], %s1633_s2 }
 0x6ac   : > { %p1904_p9 = pneg %p1903_p8 }
 0x6ae   : > { %2032 = dma.done.wait (%p1904_p9), %s1634_s30, 128  }
 0x6af   : > { %2034 = vsyncadd (%p1904_p9), %s1634_s30, 4294967168  ;;  %s2534_s27 = sld [smem:[#allocation8_spill]]  ;;  %s2537_s24 = smov %s2041_s25 }
 0x6b0   : > { %s2535_s22 = sld [smem:[#allocation6_spill]] }
 0x6b1   : > { %s2536_s26 = sld [smem:[#allocation9_spill]] }
 0x6b5   : > { %p27_p10 = scmp.ge.s32.totalorder %s2534_s27, 4  }
 0x6b6   : > { %s2538_s25 = smov %s2535_s22 }
 0x6b7   :  { %29 = sbr.rel (!%p27_p10) target bundleno = 7 (0x7), region = 126 }
 0x6bc   :  { %1640 = vsyncpa [#allocation3], 1 }
 0x6bd   :  { %1642 = vsyncpa [#allocation3 + $0x1], 1 }

// kernel: tpu_custom_call.1
= control target key start
LH: loop header
LB: loop body
LE: loop exit
PB: predicated region body
PF: predicated region fallthrough
CT: control target
= control target key end

     0   :  { %s2493_s0 = inlined_call_operand.vmem [shape: f32[16,32], index: 0, kind: input, shape index: {}]   ;;  %s2494_s1 = inlined_call_operand.vmem [shape: f32[32,32], index: 1, kind: input, shape index: {}]   ;;  %s2495_s2 = inlined_call_operand.vmem [shape: f32[1,32], index: 2, kind: input, shape index: {}]   ;;  %s2496_s3 = inlined_call_operand.vmem [shape: f32[1,32], index: 3, kind: input, shape index: {}]   ;;  %s2497_s4 = inlined_call_operand.vmem [shape: f32[1,32], index: 4, kind: input, shape index: {}]   ;;  %s2498_s5 = inlined_call_operand.vmem [shape: f32[1,32], index: 5, kind: input, shape index: {}]   ;;  %s2499_s6 = inlined_call_operand.vmem [shape: bf16[4,32,8], index: 6, kind: input, shape index: {}]   ;;  %s2500_s7 = inlined_call_operand.vmem [shape: f32[4,1,8], index: 7, kind: input, shape index: {}]   ;;  %s2501_s8 = inlined_call_operand.vmem [shape: bf16[8,32,8], index: 8, kind: input, shape index: {}]   ;;  %s2502_s9 = inlined_call_operand.vmem [shape: f32[4,1,8], index: 9, kind: input, shape index: {}]   ;;  %s2503_s10 = inlined_call_operand.vmem [shape: f32[4,1,8], index: 10, kind: input, shape index: {}]   ;;  %s2504_s11 = inlined_call_operand.vmem [shape: bf16[4,8,32], index: 11, kind: input, shape index: {}]   ;;  %s2505_s12 = inlined_call_operand.vmem [shape: f32[1,32], index: 12, kind: input, shape index: {}]   ;;  %s2506_s13 = inlined_call_operand.vmem [shape: bf16[32,128], index: 13, kind: input, shape index: {}]   ;;  %s2507_s14 = inlined_call_operand.vmem [shape: f32[1,128], index: 14, kind: input, shape index: {}]   ;;  %s2508_s15 = inlined_call_operand.vmem [shape: bf16[128,32], index: 15, kind: input, shape index: {}]   ;;  %s2509_s16 = inlined_call_operand.vmem [shape: f32[1,32], index: 16, kind: input, shape index: {}]   ;;  %s2510_s17 = inlined_call_operand.hbm [shape: f32[16,32], index: 17, kind: output, shape index: {}]  }
   0x1   :  { %2517 = sst [smem:[#allocation11_spill]] %s2493_s0 }
   0x2   :  { %2518 = sst [smem:[#allocation12_spill]] %s2494_s1 }
   0x3   :  { %2519 = sst [smem:[#allocation13_spill]] %s2495_s2 }
   0x4   :  { %22 = vsyncpa [#allocation3], 0 }
   0x5   :  { %24 = vsyncpa [#allocation3 + $0x1], 0  ;;  %s2142_s24 = smov 0   ;;  %s2144_s25 = smov 0  }
   0x6   :  { %s2146_s26 = smov 0   ;;  %s2148_s27 = smov 0  }
   0x7 LB: > { %2520 = sst [smem:[#allocation5_spill]] %s2037_s24  ;;  %s2163_s28 = sadd.s32 4294967295, %s2049_s27   ;;  %s2049_s27 = sphi %s2148_s27, %s2534_s27   ;;  %s2045_s26 = sphi %s2146_s26, %s2536_s26   ;;  %s2041_s25 = sphi %s2144_s25, %s2538_s25   ;;  %s2037_s24 = sphi %s2142_s24, %s2537_s24  }
   0x8   : > { %2521 = sst [smem:[#allocation6_spill]] %s2045_s26  ;;  %s1693_s29 = sadd.s32 4294967294, %s2049_s27  }
   0x9   : > { %2522 = sst [smem:[#allocation7_spill]] %s2049_s27  ;;  %s2167_s0 = sadd.s32 1, %s2049_s27  }
   0xa   : > { %2523 = sst [smem:[#allocation8_spill]] %s2167_s0  ;;  %s404_s30 = sadd.s32 1, %s2045_s26 }
   0xb   : > { %s401_s18 = ssub.s32 %s2049_s27, %s2167_s0  ;;  %p414_p0 = scmp.ne.s32.totalorder %s2045_s26, %s2041_s25 }
   0xc   : > { %p402_p1 = scmp.eq.s32.totalorder %s401_s18, 0  ;;  %p415_p2 = scmp.eq.s32.totalorder %s2163_s28, 1 }
   0xd   : > { %p420_p3 = scmp.ne.s32.totalorder %s2041_s25, %s2037_s24  ;;  %p421_p4 = scmp.eq.s32.totalorder %s1693_s29, 1 }
   0xe   : > { %s2178_s19 = scalar_select %p402_p1, %s2045_s26, %s404_s30  }
   0xf   : > { %p2180_p5 = por %p415_p2, %p414_p0  ;;  %p2184_p6 = por %p421_p4, %p420_p3 }
  0x10   : > { %2524 = sst [smem:[#allocation9_spill]] %s2178_s19  ;;  %p1696_p7 = scmp.ge.s32.totalorder %s2049_s27, 1 }
  0x11   : > { %s2526_s20 = scalar_select %p2184_p6, 1, 0 }
  0x12   : > { %p500_p8 = scmp.lt.s32.totalorder %s2049_s27, 3 }
  0x13   : > { %2527 = sst [smem:[#allocation10_spill]] %s2526_s20 }
  0x14   : > { %p501_p9 = pnand %p1696_p7, %p500_p8 }
  0x15   : > { %p556_p10 = scmp.lt.s32.totalorder (!%p501_p9), %s2163_s28, 1  ;;  %s1699_s21 = sshll.u32 (!%p501_p9), %s2163_s28, 1 }
  0x16   : > { %504 = sbr.rel (%p501_p9) target bundleno = 1698 (0x6a2), region = 88  ;;  %p561_p11 = scmp.lt.s32.totalorder (!%p501_p9), %s1699_s21, 3 }
  0x17   : > { %s2528_s18 = sld [smem:[#allocation11_spill]] (!%p501_p9)  ;;  %s1863_s30 = sshll.u32 (!%p501_p9), %s2163_s28, 3 }
  0x18   : > { %s2529_s24 = sld [smem:[#allocation12_spill]] (!%p501_p9)  ;;  %s1617_s0 = scalar_lea.hbm (!%p501_p9), %s2510_s17, %s1863_s30 }
  0x19   : > { %s2530_s2 = sld [smem:[#allocation13_spill]] (!%p501_p9) }
  0x1b   : > { %s557_s22 = scalar_select %p556_p10, %s2163_s28, 1  ;;  %vm570_vm0 = vcmask 261120   ;;  %v2051_v6 = vmov 32.0   ;;  %v1875_v30 = vld [vmem:[%s2501_s8 + $0x8] sm:$0xff]  ;;  %v1877_v31 = vld [vmem:[%s2501_s8 + $0x18] sm:$0xff]  ;;  %v1874_v37 = vld [vmem:[%s2501_s8] sm:$0xff] }
  0x1c   : > { %s2540_s21 = smov (!%p561_p11, %s1699_s21), 3  ;;  %1961 = vrcp.f32 %v2051_v6  ;;  %v1881_v32 = vld [vmem:[%s2501_s8 + $0x38] sm:$0xff]  ;;  %743 = vmatpush.bf16.msra.mxu0 %v1875_v30  ;;  %769 = vmatpush.bf16.msra.mxu2 %v1877_v31  ;;  %v1876_v38 = vld [vmem:[%s2501_s8 + $0x10] sm:$0xff]  ;;  %v1879_v46 = vld [vmem:[%s2501_s8 + $0x28] sm:$0xff]  ;;  %vm1129_vm11 = vcmask 64512   ;;  %vm1221_vm12 = vcmask 130048  }
  0x1d   : > { %s1698_s23 = sshll.u32 %s557_s22, 3  ;;  %s1700_s26 = sshll.u32 %s2540_s21, 3  ;;  %v1885_v35 = vld [vmem:[%s2501_s8 + $0x58] sm:$0xff]  ;;  %821 = vmatpush.bf16.msra.mxu3 %v1881_v32  ;;  %v1880_v39 = vld [vmem:[%s2501_s8 + $0x30] sm:$0xff]  ;;  %v1883_v48 = vld [vmem:[%s2501_s8 + $0x48] sm:$0xff]  ;;  %vm1365_vm13 = vcmask 1043456  }
  0x1e   : > { %s559_s19 = scalar_lea.vmem %s2528_s18, %s1698_s23  ;;  %s564_s27 = scalar_lea.vmem %s2529_s24, %s1700_s26  ;;  %873 = vmatpush.bf16.msra.mxu1 %v1885_v35  ;;  %v1884_v40 = vld [vmem:[%s2501_s8 + $0x50] sm:$0xff]  ;;  %v1878_v49 = vld [vmem:[%s2501_s8 + $0x20] sm:$0xff]  ;;  %v1889_v50 = vld [vmem:[%s2501_s8 + $0x78] sm:$0xff] }
  0x1f   : > { %v2196_v0 = vld [vmem:[%s559_s19] sm:$0xff]  ;;  %v569_v4 = vld [vmem:[%s564_s27 + $0x8] sm:$0xff]  ;;  %v1869_v51 = vld [vmem:[%s2499_s6 + $0x18] sm:$0xff]  ;;  %s553_s23 = sand.u32 1, %s2041_s25   ;;  %s1621_s21 = sshll.u32 %s1617_s0, 4  ;;  %s1622_s21 = int_to_ptr.hbm [resolvable:$true] %s1621_s21 }
  0x20   : > { %v571_v1 = vsel %vm570_vm0, %v2196_v0, 0.0  ;;  %v568_v2 = vld [vmem:[%s564_s27] sm:$0xff]  ;;  %v613_v5 = vsel %vm570_vm0, %v569_v4, 0.0  ;;  %744 = vmatpush.bf16.msra.mxu0 %v1874_v37  ;;  %770 = vmatpush.bf16.msra.mxu2 %v1876_v38  ;;  %v1888_v54 = vld [vmem:[%s2501_s8 + $0x70] sm:$0xff]  ;;  %s1697_s29 = sshll.u32 %s553_s23, 3  ;;  %s1607_s28 = scalar_lea.sflag [#allocation3], %s553_s23 }
  0x21   : > { %572 = vadd.xlane.f32.xlu2 %v571_v1  ;;  %v610_v3 = vsel %vm570_vm0, %v568_v2, 0.0  ;;  %822 = vmatpush.bf16.msra.mxu3 %v1880_v39  ;;  %v1882_v53 = vld [vmem:[%s2501_s8 + $0x40] sm:$0xff]  ;;  %v1868_v55 = vld [vmem:[%s2499_s6 + $0x10] sm:$0xff]  ;;  %s555_s19 = scalar_lea.vmem [#allocation2], %s1697_s29  ;;  %s2001_s22 = sshra.s32 %s1622_s21, 4  ;;  %s2002_s22 = int_to_ptr.hbm [resolvable:$true] %s2001_s22 }
  0x22   : > { %611 = vadd.xlane.f32.xlu0 %v610_v3  ;;  %v1962_v7 = vpop.eup %1961  ;;  %874 = vmatpush.bf16.msra.mxu1 %v1884_v40  ;;  %v1866_v30 = vld [vmem:[%s2499_s6] sm:$0xff]  ;;  %s1619_s20 = sshll.u32 %s555_s19, 4  ;;  %s2003_s18 = scalar_lea.hbm %s2002_s22, 8  ;;  %s1620_s20 = int_to_ptr.vmem [resolvable:$true] %s1619_s20 }
  0x23   : > { %v575_v8 = vmul.f32 32.0, %v1962_v7  ;;  %vm579_vm1 = vweird.f32 %v1962_v7  ;;  %v1942_v32 = vld [vmem:[%s2530_s2] ss:$0 sm:$0xff]  ;;  %p2004_p12 = scmp.ne.s32.totalorder %s2002_s22, %s2003_s18  ;;  %s2007_s29 = scalar_lea.hbm %s2510_s17, 16 }
  0x24   : > { %795 = vmatpush.bf16.msrb.mxu2 %v1879_v46  ;;  %847 = vmatpush.bf16.msrb.mxu0 %v1883_v48  ;;  %v1943_v35 = vld [vmem:[%s2496_s3] ss:$0 sm:$0xff]  ;;  %v1947_v46 = vld [vmem:[%s2502_s9 + $0x3] ss:$0 sm:$0xff]  ;;  %p2008_p1 = scmp.lt.s32.totalorder %s2002_s22, %s2510_s17  ;;  %p2009_p2 = scmp.lt.s32.totalorder %s2007_s29, %s2003_s18 }
  0x25   : > { %v576_v9 = vsub.f32 1.0, %v575_v8  ;;  %925 = vmatpush.bf16.msrb.mxu3 %v1889_v50  ;;  %v1870_v38 = vld [vmem:[%s2499_s6 + $0x20] sm:$0xff]  ;;  %p2005_p13 = pnand %p2004_p12, %p2180_p5 }
  0x26   : > { %1027 = vmatpush.bf16.msrb.mxu1 %v1869_v51  ;;  %v1944_v40 = vld [vmem:[%s2502_s9] ss:$0 sm:$0xff]  ;;  %p2010_p3 = por %p2009_p2, %p2008_p1 }
  0x27   : > { %v577_v10 = vmul.f32 %v1962_v7, %v576_v9  ;;  %p2006_p0 = pneg %p2005_p13 }
  0x28   : > { %796 = vmatpush.bf16.msrb.mxu2 %v1878_v49  ;;  %848 = vmatpush.bf16.msrb.mxu0 %v1882_v53  ;;  %v1945_v49 = vld [vmem:[%s2503_s10 + $0x1] ss:$0 sm:$0xff] }
  0x29   : > { %v578_v11 = vadd.f32 %v1962_v7, %v577_v10  ;;  %926 = vmatpush.bf16.msrb.mxu3 %v1888_v54  ;;  %p2011_p4 = pnand %p2010_p3, %p2006_p0 }
  0x2a   : > { %614 = vadd.xlane.f32.xlu0 %v613_v5  ;;  %1028 = vmatpush.bf16.msrb.mxu1 %v1868_v55 }
  0x2b   : > { %v2205_v12 = vsel %vm579_vm1, %v1962_v7, %v578_v11  ;;  %v1941_v7 = vld [vmem:[%s2498_s5] ss:$0 sm:$0xff] }
  0x94   : > { %v573_v13 = vpop.xlane.xlu2 %572 }
  0x95   : > { %v581_v14 = vmul.f32 %v2205_v12, %v573_v13  ;;  %v612_v15 = vpop.xlane.xlu0 %611 }
  0x96   : > { %v616_v16 = vmul.f32 %v612_v15, %v2205_v12 }
  0x97   : > { %v2210_v17 = vsub.f32 %v2196_v0, %v581_v14 }
  0x98   : > { %v2212_v18 = vsub.f32 %v568_v2, %v616_v16  ;;  %v1940_v2 = vld [vmem:[%s2497_s4] ss:$0 sm:$0xff] }
  0x99   : > { %v583_v19 = vmul.f32 %v2210_v17, %v2210_v17 }
  0x9a   : > { %v620_v20 = vmul.f32 %v2212_v18, %v2212_v18 }
  0x9b   : > { %v584_v21 = vsel %vm570_vm0, %v583_v19, 0.0 }
  0x9c   : > { %585 = vadd.xlane.f32.xlu2 %v584_v21  ;;  %v622_v22 = vsel %vm570_vm0, %v620_v20, 0.0 }
  0x9d   : > { %623 = vadd.xlane.f32.xlu1 %v622_v22  ;;  %v615_v23 = vpop.xlane.xlu0 %614 }
  0x9e   : > { %v617_v24 = vmul.f32 %v615_v23, %v2205_v12 }
  0xa0   : > { %v2221_v25 = vsub.f32 %v569_v4, %v617_v24 }
  0xa2   : > { %v621_v26 = vmul.f32 %v2221_v25, %v2221_v25 }
  0xa4   : > { %v625_v27 = vsel %vm570_vm0, %v621_v26, 0.0  ;;  %v1887_v26 = vld [vmem:[%s2501_s8 + $0x68] sm:$0xff] }
  0xa5   : > { %626 = vadd.xlane.f32.xlu1 %v625_v27  ;;  %v1873_v27 = vld [vmem:[%s2499_s6 + $0x38] sm:$0xff] }
 0x10f   : > { %v586_v33 = vpop.xlane.xlu2 %585 }
 0x110   : > { %v624_v28 = vpop.xlane.xlu1 %623  ;;  %v587_v36 = vmul.f32 %v586_v33, %v2205_v12  ;;  %v1872_v33 = vld [vmem:[%s2499_s6 + $0x30] sm:$0xff] }
 0x111   : > { %v628_v29 = vmul.f32 %v624_v28, %v2205_v12 }
 0x112   : > { %v588_v43 = vadd.f32 1e-05, %v587_v36 }
 0x113   : > { %v630_v34 = vadd.f32 1e-05, %v628_v29  ;;  %v1886_v29 = vld [vmem:[%s2501_s8 + $0x60] sm:$0xff] }
 0x114   : > { %vm595_vm8 = vweird.f32 %v588_v43 }
 0x115   : > { %1963 = vrsqrt.f32 %v630_v34  ;;  %vm638_vm3 = vweird.f32 %v630_v34 }
 0x118   : > { %v627_v41 = vpop.xlane.xlu1 %626 }
 0x119   : > { %v629_v42 = vmul.f32 %v627_v41, %v2205_v12 }
 0x11b   : > { %v1964_v44 = vpop.eup %1963  ;;  %v631_v45 = vadd.f32 1e-05, %v629_v42 }
 0x11c   : > { %v633_v47 = vmul.f32 %v1964_v44, %v630_v34  ;;  %vm639_vm2 = vweird.f32 %v1964_v44 }
 0x11d   : > { %1965 = vrsqrt.f32 %v631_v45  ;;  %vm640_vm4 = vmor %vm638_vm3, %vm639_vm2  ;;  %vm648_vm6 = vweird.f32 %v631_v45 }
 0x11e   : > { %1967 = vrsqrt.f32 %v588_v43  ;;  %v634_v52 = vmul.f32 %v1964_v44, %v633_v47 }
 0x120   : > { %v635_v56 = vmul.f32 0.5, %v634_v52 }
 0x122   : > { %v636_v57 = vsub.f32 1.5, %v635_v56 }
 0x123   : > { %v1966_v58 = vpop.eup %1965 }
 0x124   : > { %v1968_v59 = vpop.eup %1967  ;;  %v637_v60 = vmul.f32 %v1964_v44, %v636_v57  ;;  %v643_v61 = vmul.f32 %v1966_v58, %v631_v45  ;;  %vm649_vm5 = vweird.f32 %v1966_v58 }
 0x125   : > { %v590_v1 = vmul.f32 %v1968_v59, %v588_v43  ;;  %vm650_vm7 = vmor %vm648_vm6, %vm649_vm5  ;;  %vm596_vm9 = vweird.f32 %v1968_v59 }
 0x126   : > { %v641_v62 = vsel %vm640_vm4, %v1964_v44, %v637_v60  ;;  %v644_v63 = vmul.f32 %v1966_v58, %v643_v61  ;;  %vm597_vm10 = vmor %vm595_vm8, %vm596_vm9  ;;  %v1946_v44 = vld [vmem:[%s2502_s9 + $0x1] ss:$0 sm:$0xff] }
 0x127   : > { %v652_v3 = vmul.f32 %v641_v62, %v2212_v18  ;;  %v591_v6 = vmul.f32 %v1968_v59, %v590_v1 }
 0x128   : > { %v645_v4 = vmul.f32 0.5, %v644_v63 }
 0x129   : > { %v658_v8 = vmul.f32 %v1940_v2, %v652_v3  ;;  %v592_v11 = vmul.f32 0.5, %v591_v6 }
 0x12a   : > { %v646_v5 = vsub.f32 1.5, %v645_v4 }
 0x12b   : > { %v664_v13 = vadd.f32 %v1941_v7, %v658_v8  ;;  %v593_v16 = vsub.f32 1.5, %v592_v11 }
 0x12c   : > { %v647_v9 = vmul.f32 %v1966_v58, %v646_v5 }
 0x12d   : > { %v667_v18 = vpack.c.bf16 %v664_v13, %v664_v13  ;;  %v594_v21 = vmul.f32 %v1968_v59, %v593_v16 }
 0x12e   : > { %v651_v10 = vsel %vm650_vm7, %v1966_v58, %v647_v9 }
 0x12f   : > { %v653_v14 = vmul.f32 %v651_v10, %v2221_v25  ;;  %v719_v22 = vunpack.c.l.b16 %v667_v18  ;;  %v1867_v25 = vld [vmem:[%s2499_s6 + $0x8] sm:$0xff]  ;;  %v598_v28 = vsel %vm597_vm10, %v1968_v59, %v594_v21  ;;  %v1949_v21 = vld [vmem:[%s2500_s7 + $0x1] ss:$0 sm:$0xff] }
 0x130   : > { %v599_v31 = vmul.f32 %v598_v28, %v2210_v17  ;;  %v1871_v17 = vld [vmem:[%s2499_s6 + $0x28] sm:$0xff]  ;;  %v1951_v28 = vld [vmem:[%s2503_s10 + $0x3] ss:$0 sm:$0xff] }
 0x131   : > { %v659_v15 = vmul.f32 %v1940_v2, %v653_v14 }
 0x132   : > { %v604_v34 = vmul.f32 %v1942_v32, %v599_v31 }
 0x133   : > { %v665_v19 = vadd.f32 %v1941_v7, %v659_v15  ;;  %v1948_v7 = vld [vmem:[%s2503_s10] ss:$0 sm:$0xff] }
 0x134   : > { %v609_v36 = vadd.f32 %v1943_v35, %v604_v34 }
 0x135   : > { %v668_v20 = vpack.c.bf16 %v665_v19, %v665_v19 }
 0x136   : > { %v666_v37 = vpack.c.bf16 %v609_v36, %v609_v36 }
 0x137   : > { %v720_v23 = vunpack.c.l.b16 %v668_v20 }
 0x139   : > { %v721_v24 = vpack.c.b16 %v720_v23, %v719_v22 }
 0x13b   : > { %1709 = vmatmul.msk.bf16.vlgmr.msra.gmra.mxu0 %vm570_vm0, %v721_v24  ;;  %1718 = vmatmul.msk.bf16.vlgmr.msra.gmra.mxu2 %vm570_vm0, %v721_v24 }
 0x13c   : > { %1736 = vmatmul.msk.bf16.vlgmr.msra.gmra.mxu3 %vm570_vm0, %v721_v24  ;;  %1754 = vmatmul.msk.bf16.vlgmr.msra.gmra.mxu1 %vm570_vm0, %v721_v24 }
 0x13d   : > { %899 = vmatpush.bf16.msra.mxu2 %v1887_v26  ;;  %1002 = vmatpush.bf16.msra.mxu0 %v1867_v25  ;;  %v1950_v26 = vld [vmem:[%s2502_s9 + $0x2] ss:$0 sm:$0xff] }
 0x13e   : > { %1077 = vmatpush.bf16.msra.mxu3 %v1873_v27 }
 0x141   : > { %900 = vmatpush.bf16.msra.mxu2 %v1886_v29  ;;  %1003 = vmatpush.bf16.msra.mxu0 %v1866_v30 }
 0x142   : > { %1078 = vmatpush.bf16.msra.mxu3 %v1872_v33 }
 0x14b   : > { %1727 = vmatmul.msk.bf16.vlgmr.msrb.gmra.mxu2 %vm570_vm0, %v721_v24  ;;  %1745 = vmatmul.msk.bf16.vlgmr.msrb.gmra.mxu0 %vm570_vm0, %v721_v24 }
 0x14c   : > { %1772 = vmatmul.msk.bf16.vlgmr.msrb.gmra.mxu3 %vm570_vm0, %v721_v24  ;;  %1790 = vmatmul.msk.bf16.vlgmr.msrb.gmra.mxu1 %vm570_vm0, %v666_v37 }
 0x14d   : > { %1052 = vmatpush.bf16.msrb.mxu2 %v1871_v17 }
 0x151   : > { %1053 = vmatpush.bf16.msrb.mxu2 %v1870_v38 }
 0x15b   : > { %1763 = vmatmul.msk.bf16.vlgmr.msra.gmra.mxu2 %vm570_vm0, %v721_v24  ;;  %1781 = vmatmul.msk.bf16.vlgmr.msra.gmra.mxu0 %vm570_vm0, %v666_v37 }
 0x15c   : > { %1808 = vmatmul.msk.bf16.vlgmr.msra.gmra.mxu3 %vm570_vm0, %v666_v37 }
 0x16b   : > { %1799 = vmatmul.msk.bf16.vlgmr.msrb.gmra.mxu2 %vm570_vm0, %v666_v37 }
 0x1b8   : > { %v746_v39 = vpop.f32.mrf.mxu0 }
 0x1b9   : > { %v876_v41 = vpop.f32.mrf.mxu1  ;;  %v1100_v42 = vadd.f32 %v1944_v40, %v746_v39 }
 0x1ba   : > { %v951_v57 = vadd.f32 %v1945_v49, %v876_v41 }
 0x1bb   : > { %v1108_v48 = vpack.c.bf16 %v1100_v42, %v1100_v42 }
 0x1bc   : > { %v1118_v5 = vpack.c.bf16 %v951_v57, %v951_v57  ;;  %v1954_v57 = vld [vmem:[%s2500_s7 + $0x3] ss:$0 sm:$0xff] }
 0x1bd   : > { %v1126_v56 = vunpack.c.l.b16 %v1108_v48 }
 0x1be   : > { %v772_v43 = vpop.f32.mrf.mxu2  ;;  %v1294_v18 = vunpack.c.l.b16 %v1118_v5 }
 0x1bf   : > { %v824_v45 = vpop.f32.mrf.mxu3  ;;  %v1102_v52 = vadd.f32 %v1946_v44, %v772_v43 }
 0x1c0   : > { %v748_v47 = vpop.f32.mrf.mxu0  ;;  %v1106_v55 = vadd.f32 %v1947_v46, %v824_v45 }
 0x1c1   : > { %v1101_v50 = vadd.f32 %v1944_v40, %v748_v47  ;;  %v878_v51 = vpop.f32.mrf.mxu1  ;;  %v1110_v60 = vpack.c.bf16 %v1102_v52, %v1102_v52  ;;  %v1952_v40 = vld [vmem:[%s2500_s7] ss:$0 sm:$0xff] }
 0x1c2   : > { %v952_v54 = vadd.f32 %v1945_v49, %v878_v51  ;;  %v1114_v2 = vpack.c.bf16 %v1106_v55, %v1106_v55 }
 0x1c3   : > { %v1109_v53 = vpack.c.bf16 %v1101_v50, %v1101_v50  ;;  %v1151_v11 = vunpack.c.l.b16 %v1110_v60 }
 0x1c4   : > { %v1119_v62 = vpack.c.bf16 %v952_v54, %v952_v54  ;;  %v1199_v15 = vunpack.c.l.b16 %v1114_v2 }
 0x1c5   : > { %v1127_v58 = vunpack.c.l.b16 %v1109_v53 }
 0x1c6   : > { %v774_v59 = vpop.f32.mrf.mxu2  ;;  %v1295_v13 = vunpack.c.l.b16 %v1119_v62 }
 0x1c7   : > { %v1128_v61 = vpack.c.b16 %v1127_v58, %v1126_v56  ;;  %v1103_v63 = vadd.f32 %v1946_v44, %v774_v59  ;;  %v826_v1 = vpop.f32.mrf.mxu3 }
 0x1c8   : > { %v1107_v3 = vadd.f32 %v1947_v46, %v826_v1  ;;  %v850_v4 = vpop.f32.mrf.mxu0  ;;  %v1296_v24 = vpack.c.b16 %v1295_v13, %v1294_v18  ;;  %v1955_v13 = vld [vmem:[%s2500_s7 + $0x2] ss:$0 sm:$0xff] }
 0x1c9   : > { %v1111_v6 = vpack.c.bf16 %v1103_v63, %v1103_v63  ;;  %v1030_v8 = vpop.f32.mrf.mxu1  ;;  %v1134_v9 = vsel %vm1129_vm11, %v1128_v61, 0  ;;  %v949_v20 = vadd.f32 %v1948_v7, %v850_v4  ;;  %v1953_v61 = vld [vmem:[%s2503_s10 + $0x2] ss:$0 sm:$0xff] }
 0x1ca   : > { %v1115_v10 = vpack.c.bf16 %v1107_v3, %v1107_v3  ;;  %1143 = vmatpush.bf16.xpose.msrb.mxu0 %v1134_v9  ;;  %v1031_v32 = vadd.f32 %v1949_v21, %v1030_v8 }
 0x1cb   : > { %v1152_v14 = vunpack.c.l.b16 %v1111_v6  ;;  %v1116_v31 = vpack.c.bf16 %v949_v20, %v949_v20 }
 0x1cc   : > { %v1200_v16 = vunpack.c.l.b16 %v1115_v10  ;;  %v1085_v38 = vpack.c.bf16 %v1031_v32, %v1031_v32 }
 0x1cd   : > { %v1153_v19 = vpack.c.b16 %v1152_v14, %v1151_v11  ;;  %v1272_v37 = vunpack.c.l.b16 %v1116_v31 }
 0x1ce   : > { %v1201_v22 = vpack.c.b16 %v1200_v16, %v1199_v15  ;;  %v798_v23 = vpop.f32.mrf.mxu2 }
 0x1cf   : > { %v928_v25 = vpop.f32.mrf.mxu3  ;;  %v1158_v27 = vsel %vm1129_vm11, %v1153_v19, 0  ;;  %v1104_v35 = vadd.f32 %v1950_v26, %v798_v23 }
 0x1d0   : > { %v852_v29 = vpop.f32.mrf.mxu0  ;;  %1167 = vmatpush.bf16.xpose.msra.mxu1 %v1158_v27  ;;  %v1206_v30 = vsel %vm1129_vm11, %v1201_v22, 0  ;;  %v955_v17 = vadd.f32 %v1951_v28, %v928_v25 }
 0x1d1   : > { %v950_v33 = vadd.f32 %v1948_v7, %v852_v29  ;;  %v1032_v34 = vpop.f32.mrf.mxu1  ;;  %1215 = vmatpush.bf16.xpose.msrb.mxu3 %v1206_v30  ;;  %v1112_v42 = vpack.c.bf16 %v1104_v35, %v1104_v35 }
 0x1d2   : > { %v1122_v46 = vpack.c.bf16 %v955_v17, %v955_v17 }
 0x1d3   : > { %v1117_v36 = vpack.c.bf16 %v950_v33, %v950_v33  ;;  %v1175_v52 = vunpack.c.l.b16 %v1112_v42 }
 0x1d4   : > { %v1338_v55 = vunpack.c.l.b16 %v1122_v46 }
 0x1d5   : > { %v1273_v39 = vunpack.c.l.b16 %v1117_v36 }
 0x1d6   : > { %v800_v41 = vpop.f32.mrf.mxu2 }
 0x1d7   : > { %v1274_v43 = vpack.c.b16 %v1273_v39, %v1272_v37  ;;  %v1105_v44 = vadd.f32 %v1950_v26, %v800_v41  ;;  %v930_v45 = vpop.f32.mrf.mxu3  ;;  %1810 = vmatmul.msk.bf16.vlgmr.msra.gmra.mxu1 %vm1129_vm11, %v1085_v38 }
 0x1d8   : > { %1308 = vmatpush.bf16.msrb.mxu1 %v1296_v24  ;;  %v956_v47 = vadd.f32 %v1951_v28, %v930_v45  ;;  %v1005_v48 = vpop.f32.mrf.mxu0 }
 0x1d9   : > { %v1113_v49 = vpack.c.bf16 %v1105_v44, %v1105_v44  ;;  %v1006_v50 = vadd.f32 %v1952_v40, %v1005_v48  ;;  %1286 = vmatpush.bf16.msra.mxu0 %v1274_v43 }
 0x1da   : > { %v1123_v51 = vpack.c.bf16 %v956_v47, %v956_v47 }
 0x1db   : > { %v1176_v53 = vunpack.c.l.b16 %v1113_v49  ;;  %v1084_v54 = vpack.c.bf16 %v1006_v50, %v1006_v50 }
 0x1dc   : > { %v1339_v56 = vunpack.c.l.b16 %v1123_v51 }
 0x1dd   : > { %v1177_v58 = vpack.c.b16 %v1176_v53, %v1175_v52  ;;  %1809 = vmatmul.msk.bf16.vlgmr.msrb.gmra.mxu0 %vm1129_vm11, %v1084_v54 }
 0x1de   : > { %v1340_v59 = vpack.c.b16 %v1339_v56, %v1338_v55  ;;  %v902_v60 = vpop.f32.mrf.mxu2 }
 0x1df   : > { %v1080_v62 = vpop.f32.mrf.mxu3  ;;  %v1182_v63 = vsel %vm1129_vm11, %v1177_v58, 0  ;;  %v953_v4 = vadd.f32 %v1953_v61, %v902_v60 }
 0x1e0   : > { %v1081_v1 = vadd.f32 %v1954_v57, %v1080_v62  ;;  %1352 = vmatpush.bf16.msra.mxu3 %v1340_v59  ;;  %v1007_v2 = vpop.f32.mrf.mxu0  ;;  %1191 = vmatpush.bf16.xpose.msra.mxu2 %v1182_v63 }
 0x1e1   : > { %v1120_v6 = vpack.c.bf16 %v953_v4, %v953_v4  ;;  %v965_v4 = vld [vmem:[%s2504_s11] sm:$0xf] }
 0x1e2   : > { %v1087_v3 = vpack.c.bf16 %v1081_v1, %v1081_v1 }
 0x1e3   : > { %v1316_v10 = vunpack.c.l.b16 %v1120_v6  ;;  %v968_v6 = vld [vmem:[%s2504_s11 + $0xc] sm:$0xf] }
 0x1e4   : > { %1812 = vmatmul.msk.bf16.vlgmr.msrb.gmra.mxu3 %vm1129_vm11, %v1087_v3 }
 0x1e6   : > { %v904_v5 = vpop.f32.mrf.mxu2 }
 0x1e7   : > { %v954_v7 = vadd.f32 %v1953_v61, %v904_v5  ;;  %v1082_v8 = vpop.f32.mrf.mxu3  ;;  %v1367_v5 = vsel %vm1365_vm13, %v965_v4, 0  ;;  %v1958_v4 = vld [vmem:[%s2498_s5] ss:$0 sm:$0xff] }
 0x1e8   : > { %1376 = vmatpush.bf16.msrb.mxu0 %v1367_v5  ;;  %v967_v8 = vld [vmem:[%s2504_s11 + $0x8] sm:$0xf] }
 0x1e9   : > { %v1121_v9 = vpack.c.bf16 %v954_v7, %v954_v7  ;;  %v1424_v7 = vsel %vm1365_vm13, %v968_v6, 0 }
 0x1ea   : > { %1433 = vmatpush.bf16.msrb.mxu3 %v1424_v7 }
 0x1eb   : > { %v1317_v11 = vunpack.c.l.b16 %v1121_v9  ;;  %v1405_v9 = vsel %vm1365_vm13, %v967_v8, 0  ;;  %v1893_v8 = vld [vmem:[%s2508_s15 + $0x8] sm:$0xff] }
 0x1ed   : > { %v1318_v14 = vpack.c.b16 %v1317_v11, %v1316_v10  ;;  %v966_v10 = vld [vmem:[%s2504_s11 + $0x4] sm:$0xf] }
 0x1ee   : > { %v1055_v15 = vpop.f32.mrf.mxu2  ;;  %v1386_v11 = vsel %vm1365_vm13, %v966_v10, 0  ;;  %v1959_v10 = vld [vmem:[%s2507_s14] ss:$0 sm:$0xff] }
 0x1ef   : > { %v1056_v16 = vadd.f32 %v1955_v13, %v1055_v15  ;;  %1330 = vmatpush.bf16.msrb.mxu2 %v1318_v14  ;;  %1395 = vmatpush.bf16.msra.mxu1 %v1386_v11 }
 0x1f1   : > { %v1086_v18 = vpack.c.bf16 %v1056_v16, %v1056_v16 }
 0x1f3   : > { %1811 = vmatmul.msk.bf16.vlgmr.msra.gmra.mxu2 %vm1129_vm11, %v1086_v18 }
 0x1f4   : > { %1414 = vmatpush.bf16.msra.mxu2 %v1405_v9  ;;  %v1892_v9 = vld [vmem:[%s2508_s15] sm:$0xff] }
 0x1f6   : > { %v1057_v19 = vpop.f32.mrf.mxu2 }
 0x254   : > { %v1169_v20 = vpop.f32.mrf.mxu1 }
 0x255   : > { %v1225_v31 = vsel %vm1221_vm12, %v1169_v20, -inf }
 0x25a   : > { %v1145_v21 = vpop.f32.mrf.mxu0 }
 0x25b   : > { %v1222_v22 = vsel %vm1221_vm12, %v1145_v21, -inf }
 0x25c   : > { %v1171_v23 = vpop.f32.mrf.mxu1  ;;  %1223 = vmax.xlane.f32.xlu2 %v1222_v22 }
 0x262   : > { %v1147_v24 = vpop.f32.mrf.mxu0 }
 0x267   : > { %v1217_v26 = vpop.f32.mrf.mxu3 }
 0x268   : > { %v1231_v25 = vsel %vm1221_vm12, %v1217_v26, -inf }
 0x269   : > { %1232 = vmax.xlane.f32.xlu1 %v1231_v25 }
 0x26f   : > { %v1219_v27 = vpop.f32.mrf.mxu3 }
 0x276   : > { %v1193_v28 = vpop.f32.mrf.mxu2 }
 0x277   : > { %v1228_v29 = vsel %vm1221_vm12, %v1193_v28, -inf }
 0x278   : > { %1229 = vmax.xlane.f32.xlu0 %v1228_v29 }
 0x27e   : > { %v1195_v30 = vpop.f32.mrf.mxu2 }
 0x280   : > { %1226 = vmax.xlane.f32.xlu0 %v1225_v31 }
 0x2cf   : > { %v1224_v32 = vpop.xlane.xlu2 %1223 }
 0x2d0   : > { %v1234_v33 = vsub.f32 %v1145_v21, %v1224_v32 }
 0x2d2   : > { %v1238_v34 = vmul.f32 1.442695, %v1234_v33 }
 0x2d4   : > { %1969 = vpow2.f32 %v1238_v34 }
 0x2da   : > { %v1970_v35 = vpop.eup %1969 }
 0x2db   : > { %v1246_v36 = vsel %vm1221_vm12, %v1970_v35, 0.0 }
 0x2dc   : > { %v1233_v17 = vpop.xlane.xlu1 %1232  ;;  %1247 = vadd.xlane.f32.xlu0 %v1246_v36 }
 0x2dd   : > { %v1237_v37 = vsub.f32 %v1217_v26, %v1233_v17 }
 0x2df   : > { %v1244_v38 = vmul.f32 1.442695, %v1237_v37 }
 0x2e1   : > { %1971 = vpow2.f32 %v1244_v38 }
 0x2e7   : > { %v1972_v39 = vpop.eup %1971 }
 0x2e8   : > { %v1255_v40 = vsel %vm1221_vm12, %v1972_v39, 0.0 }
 0x2e9   : > { %1256 = vadd.xlane.f32.xlu2 %v1255_v40 }
 0x2eb   : > { %v1230_v41 = vpop.xlane.xlu0 %1229 }
 0x2ec   : > { %v1236_v42 = vsub.f32 %v1193_v28, %v1230_v41 }
 0x2ee   : > { %v1242_v43 = vmul.f32 1.442695, %v1236_v42 }
 0x2f0   : > { %1973 = vpow2.f32 %v1242_v43 }
 0x2f3   : > { %v1227_v44 = vpop.xlane.xlu0 %1226 }
 0x2f4   : > { %v1235_v45 = vsub.f32 %v1169_v20, %v1227_v44 }
 0x2f6   : > { %v1974_v46 = vpop.eup %1973  ;;  %v1240_v47 = vmul.f32 1.442695, %v1235_v45 }
 0x2f7   : > { %v1252_v48 = vsel %vm1221_vm12, %v1974_v46, 0.0 }
 0x2f8   : > { %1975 = vpow2.f32 %v1240_v47  ;;  %1253 = vadd.xlane.f32.xlu1 %v1252_v48 }
 0x2fe   : > { %v1976_v49 = vpop.eup %1975 }
 0x2ff   : > { %v1249_v50 = vsel %vm1221_vm12, %v1976_v49, 0.0 }
 0x300   : > { %1250 = vadd.xlane.f32.xlu1 %v1249_v50  ;;  %v1899_v50 = vld [vmem:[%s2508_s15 + $0x38] sm:$0xff] }
 0x34f   : > { %v1248_v51 = vpop.xlane.xlu0 %1247 }
 0x350   : > { %1977 = vrcp.f32 %v1248_v51 }
 0x356   : > { %v1978_v52 = vpop.eup %1977 }
 0x357   : > { %v1262_v53 = vmul.f32 %v1978_v52, %v1970_v35 }
 0x359   : > { %v1266_v54 = vpack.c.bf16 %v1262_v53, %v1262_v53  ;;  %v1898_v53 = vld [vmem:[%s2508_s15 + $0x30] sm:$0xff] }
 0x35b   : > { %1813 = vmatmul.msk.bf16.vlgmr.msra.gmra.mxu0 %vm1221_vm12, %v1266_v54 }
 0x35c   : > { %v1257_v55 = vpop.xlane.xlu2 %1256 }
 0x35d   : > { %1979 = vrcp.f32 %v1257_v55  ;;  %v1897_v55 = vld [vmem:[%s2508_s15 + $0x28] sm:$0xff] }
 0x363   : > { %v1980_v56 = vpop.eup %1979 }
 0x364   : > { %v1265_v57 = vmul.f32 %v1980_v56, %v1972_v39  ;;  %v1956_v39 = vld [vmem:[%s2505_s12] ss:$0 sm:$0xff] }
 0x365   : > { %v1896_v56 = vld [vmem:[%s2508_s15 + $0x20] sm:$0xff] }
 0x366   : > { %v1269_v58 = vpack.c.bf16 %v1265_v57, %v1265_v57 }
 0x368   : > { %1816 = vmatmul.msk.bf16.vlgmr.msra.gmra.mxu3 %vm1221_vm12, %v1269_v58 }
 0x36b   : > { %v1254_v59 = vpop.xlane.xlu1 %1253 }
 0x36c   : > { %1981 = vrcp.f32 %v1254_v59 }
 0x372   : > { %v1982_v60 = vpop.eup %1981 }
 0x373   : > { %v1264_v61 = vmul.f32 %v1982_v60, %v1974_v46  ;;  %v1251_v62 = vpop.xlane.xlu1 %1250 }
 0x374   : > { %1983 = vrcp.f32 %v1251_v62 }
 0x375   : > { %v1268_v63 = vpack.c.bf16 %v1264_v61, %v1264_v61  ;;  %v1894_v61 = vld [vmem:[%s2508_s15 + $0x10] sm:$0xff] }
 0x377   : > { %1815 = vmatmul.msk.bf16.vlgmr.msrb.gmra.mxu2 %vm1221_vm12, %v1268_v63 }
 0x37a   : > { %v1984_v1 = vpop.eup %1983 }
 0x37b   : > { %v1263_v2 = vmul.f32 %v1984_v1, %v1976_v49  ;;  %v1890_v49 = vld [vmem:[%s2506_s13] sm:$0xff] }
 0x37c   : > { %v1957_v1 = vld [vmem:[%s2497_s4] ss:$0 sm:$0xff] }
 0x37d   : > { %v1267_v3 = vpack.c.bf16 %v1263_v2, %v1263_v2 }
 0x37f   : > { %1814 = vmatmul.msk.bf16.vlgmr.msrb.gmra.mxu1 %vm1221_vm12, %v1267_v3 }
 0x380   : > { %1591 = vmatpush.bf16.msrb.mxu1 %v1899_v50 }
 0x384   : > { %1592 = vmatpush.bf16.msrb.mxu1 %v1898_v53 }
 0x388   : > { %1593 = vmatpush.bf16.msrb.mxu1 %v1897_v55 }
 0x38c   : > { %1594 = vmatpush.bf16.msrb.mxu1 %v1896_v56 }
 0x3d8   : > { %v1288_v13 = vpop.f32.mrf.mxu0 }
 0x3d9   : > { %v1358_v14 = vpack.c.bf16 %v1288_v13, %v1288_v13 }
 0x3db   : > { %1817 = vmatmul.msk.bf16.vlgmr.msrb.gmra.mxu0 %vm1129_vm11, %v1358_v14 }
 0x3e0   : > { %v1290_v15 = vpop.f32.mrf.mxu0 }
 0x3eb   : > { %v1354_v16 = vpop.f32.mrf.mxu3 }
 0x3ec   : > { %v1361_v18 = vpack.c.bf16 %v1354_v16, %v1354_v16 }
 0x3ee   : > { %1820 = vmatmul.msk.bf16.vlgmr.msrb.gmra.mxu3 %vm1129_vm11, %v1361_v18  ;;  %v1960_v18 = vld [vmem:[%s2509_s16] ss:$0 sm:$0xff] }
 0x3f3   : > { %v1356_v19 = vpop.f32.mrf.mxu3 }
 0x3fa   : > { %v1332_v20 = vpop.f32.mrf.mxu2 }
 0x3fb   : > { %v1360_v21 = vpack.c.bf16 %v1332_v20, %v1332_v20 }
 0x3fc   : > { %v1310_v22 = vpop.f32.mrf.mxu1 }
 0x3fd   : > { %v1359_v23 = vpack.c.bf16 %v1310_v22, %v1310_v22  ;;  %1819 = vmatmul.msk.bf16.vlgmr.msra.gmra.mxu2 %vm1129_vm11, %v1360_v21 }
 0x3ff   : > { %1818 = vmatmul.msk.bf16.vlgmr.msra.gmra.mxu1 %vm1129_vm11, %v1359_v23 }
 0x402   : > { %v1334_v24 = vpop.f32.mrf.mxu2 }
 0x404   : > { %v1312_v26 = vpop.f32.mrf.mxu1 }
 0x458   : > { %v1378_v25 = vpop.f32.mrf.mxu0 }
 0x459   : > { %v1439_v32 = vsel %vm570_vm0, %v1378_v25, 0.0 }
 0x460   : > { %v1380_v27 = vpop.f32.mrf.mxu0 }
 0x471   : > { %v1435_v28 = vpop.f32.mrf.mxu3 }
 0x472   : > { %v1444_v17 = vsel %vm570_vm0, %v1435_v28, 0.0 }
 0x479   : > { %v1437_v29 = vpop.f32.mrf.mxu3 }
 0x47c   : > { %v1397_v30 = vpop.f32.mrf.mxu1 }
 0x47d   : > { %v1440_v31 = vsel %vm570_vm0, %v1397_v30, 0.0 }
 0x47e   : > { %v1441_v33 = vadd.f32 %v1440_v31, %v1439_v32 }
 0x480   : > { %v1416_v34 = vpop.f32.mrf.mxu2 }
 0x481   : > { %v1442_v35 = vsel %vm570_vm0, %v1416_v34, 0.0 }
 0x482   : > { %v1443_v36 = vadd.f32 %v1442_v35, %v1441_v33 }
 0x484   : > { %v1445_v37 = vadd.f32 %v1444_v17, %v1443_v36  ;;  %v1399_v38 = vpop.f32.mrf.mxu1 }
 0x486   : > { %v1446_v40 = vadd.f32 %v1445_v37, %v2196_v0  ;;  %v1891_v0 = vld [vmem:[%s2506_s13 + $0x8] sm:$0xff] }
 0x487   : > { %1514 = vmatpush.bf16.msra.mxu0 %v1891_v0 }
 0x488   : > { %v1418_v41 = vpop.f32.mrf.mxu2  ;;  %v2408_v42 = vadd.f32 %v1956_v39, %v1446_v40 }
 0x48a   : > { %v1452_v43 = vsel %vm570_vm0, %v2408_v42, 0.0 }
 0x48b   : > { %1453 = vadd.xlane.f32.xlu2 %v1452_v43  ;;  %1515 = vmatpush.bf16.msra.mxu0 %v1890_v49 }
 0x4fe   : > { %v1454_v44 = vpop.xlane.xlu2 %1453 }
 0x4ff   : > { %v1455_v45 = vmul.f32 %v1454_v44, %v2205_v12 }
 0x501   : > { %v1456_v46 = vsub.f32 %v2408_v42, %v1455_v45 }
 0x503   : > { %v1457_v47 = vmul.f32 %v1456_v46, %v1456_v46 }
 0x505   : > { %v1458_v48 = vsel %vm570_vm0, %v1457_v47, 0.0 }
 0x506   : > { %1459 = vadd.xlane.f32.xlu0 %v1458_v48 }
 0x579   : > { %v1460_v51 = vpop.xlane.xlu0 %1459 }
 0x57a   : > { %v1461_v52 = vmul.f32 %v1460_v51, %v2205_v12  ;;  %v1895_v12 = vld [vmem:[%s2508_s15 + $0x18] sm:$0xff] }
 0x57b   : > { %1595 = vmatpush.bf16.msrb.mxu1 %v1895_v12 }
 0x57c   : > { %v1462_v54 = vadd.f32 1e-05, %v1461_v52 }
 0x57e   : > { %1985 = vrsqrt.f32 %v1462_v54  ;;  %vm1469_vm15 = vweird.f32 %v1462_v54 }
 0x57f   : > { %1596 = vmatpush.bf16.msrb.mxu1 %v1894_v61 }
 0x583   : > { %1597 = vmatpush.bf16.msrb.mxu1 %v1893_v8 }
 0x584   : > { %v1986_v57 = vpop.eup %1985 }
 0x585   : > { %v1464_v58 = vmul.f32 %v1986_v57, %v1462_v54  ;;  %vm1470_vm14 = vweird.f32 %v1986_v57 }
 0x586   : > { %vm1471_vm1 = vmor %vm1469_vm15, %vm1470_vm14 }
 0x587   : > { %v1465_v59 = vmul.f32 %v1986_v57, %v1464_v58  ;;  %1598 = vmatpush.bf16.msrb.mxu1 %v1892_v9 }
 0x589   : > { %v1466_v60 = vmul.f32 0.5, %v1465_v59 }
 0x58b   : > { %v1467_v62 = vsub.f32 1.5, %v1466_v60 }
 0x58d   : > { %v1468_v63 = vmul.f32 %v1986_v57, %v1467_v62 }
 0x58f   : > { %v1472_v2 = vsel %vm1471_vm1, %v1986_v57, %v1468_v63 }
 0x590   : > { %v1473_v3 = vmul.f32 %v1472_v2, %v1456_v46 }
 0x592   : > { %v1478_v5 = vmul.f32 %v1957_v1, %v1473_v3 }
 0x594   : > { %v1483_v6 = vadd.f32 %v1958_v4, %v1478_v5 }
 0x596   : > { %v1484_v7 = vpack.c.bf16 %v1483_v6, %v1483_v6 }
 0x598   : > { %1829 = vmatmul.msk.bf16.vlgmr.msra.gmra.mxu0 %vm570_vm0, %v1484_v7 }
 0x615   : > { %v1517_v11 = vpop.f32.mrf.mxu0 }
 0x616   : > { %v1518_v13 = vadd.f32 %v1959_v10, %v1517_v11 }
 0x618   : > { %v1521_v14 = vmax.f32 %v1518_v13, 0.0 }
 0x61a   : > { %v1522_v15 = vpack.c.bf16 %v1521_v14, %v1521_v14 }
 0x61c   : > { %1599 = vmatmul.bf16.vlgmr.msrb.gmra.mxu1 %v1522_v15 }
 0x61d   : > { %v1519_v16 = vpop.f32.mrf.mxu0 }
 0x699   : > { %v1600_v19 = vpop.f32.mrf.mxu1 }
 0x69a   : > { %v1601_v20 = vadd.f32 %v1960_v18, %v1600_v19 }
 0x69c   : > { %v1604_v21 = vadd.f32 %v1601_v20, %v2408_v42 }
 0x69e   : > { %1605 = vst.msk [vmem:[%s555_s19] sm:$0xff] %vm570_vm0, %v1604_v21 }
 0x69f   : > { %2014 = shalt.err (!%p2011_p4)
}
 0x6a0   : > { %1900 = dma.vmem_to_hbm [thread:$0]  (%p2180_p5), %s1620_s20, 128, %s1622_s21, %s1607_s28  }
 0x6a1   : > { %v1602_v22 = vpop.f32.mrf.mxu1 }
 0x6a2 PF: > { %s2531_s23 = sld [smem:[#allocation7_spill]] }
 0x6a3   : > { %s2532_s0 = sld [smem:[#allocation5_spill]] }
 0x6a8   : > { %p1906_p7 = scmp.ge.s32.totalorder %s2531_s23, 2 }
 0x6a9   : > { %s1633_s2 = sand.u32 1, %s2532_s0  }
 0x6aa   : > { %p1903_p8 = pnand %p1906_p7, %p2184_p6  ;;  %s1634_s30 = scalar_lea.sflag [#allocation3], %s1633_s2 }
 0x6ac   : > { %p1904_p9 = pneg %p1903_p8 }
 0x6ae   : > { %2032 = dma.done.wait (%p1904_p9), %s1634_s30, 128  }
 0x6af   : > { %2034 = vsyncadd (%p1904_p9), %s1634_s30, 4294967168  ;;  %s2534_s27 = sld [smem:[#allocation8_spill]]  ;;  %s2537_s24 = smov %s2041_s25 }
 0x6b0   : > { %s2535_s22 = sld [smem:[#allocation6_spill]] }
 0x6b1   : > { %s2536_s26 = sld [smem:[#allocation9_spill]] }
 0x6b5   : > { %p27_p10 = scmp.ge.s32.totalorder %s2534_s27, 4  }
 0x6b6   : > { %s2538_s25 = smov %s2535_s22 }
 0x6b7   :  { %29 = sbr.rel (!%p27_p10) target bundleno = 7 (0x7), region = 126 }
 0x6bc   :  { %1640 = vsyncpa [#allocation3], 1 }
 0x6bd   :  { %1642 = vsyncpa [#allocation3 + $0x1], 1 }

</bundles_post_ra>
